<compile_context>
chip_gen: v7x
topology: tpu7x:2x2x1
jax: 0.10.0
libtpu: 0.0.40
codegen_flags: <defaults>
</compile_context>

<pallas_src>
import jax
import jax.numpy as jnp
from jax import lax
from jax.experimental import pallas as pl
from jax.experimental.pallas import tpu as pltpu

_LANE = 128
_SUBLANE = 8


def _lstm_fc_kernel(x_ref, wih0_ref, whh0_ref, b0_ref,
                    wih1_ref, whh1_ref, b1_ref,
                    wfc_ref, bfc_ref, out_ref,
                    pre_s, seq_s):
    """Two-layer LSTM + fused flatten->Linear for one batch block.

    x_ref:    (T*BB, D)   time-major rows (t, b_local) for this batch block
    wih*_ref: (D|H, 4H)   pre-transposed input->gate weights
    whh*_ref: (H, 4H)     pre-transposed hidden->gate weights
    b*_ref:   (1, 4H)     combined b_ih + b_hh
    wfc_ref:  (T, H, Cp)  fc weight arranged so flatten index (t*H+h) matches,
                          lane-padded C -> Cp
    bfc_ref:  (1, Cp)
    out_ref:  (BB, Cp)
    pre_s:    (T*BB, 4H)  scratch: hoisted gate pre-activations
    seq_s:    (T*BB, H)   scratch: per-layer output sequence (reused by L0/L1)
    """
    TB, H = seq_s.shape
    BB, Cp = out_ref.shape
    T = TB // BB
    f32 = jnp.float32

    def run_recurrence(whh):
        # Only the h @ W_hh recurrence remains inside the sequential loop; the
        # input projection + bias are already folded into pre_s.
        def step(t, carry):
            h, c = carry
            row = pl.multiple_of(t * BB, BB)
            gates = pre_s[pl.ds(row, BB), :] + jnp.dot(
                h, whh, preferred_element_type=f32)
            # Whole-(BB, 4H) vreg activations (EUP), then 32-lane gate slices.
            # PyTorch LSTM gate order: i, f, g, o.
            sig = jax.nn.sigmoid(gates)
            th = jnp.tanh(gates)
            i = sig[:, 0 * H:1 * H]
            f = sig[:, 1 * H:2 * H]
            g = th[:, 2 * H:3 * H]
            o = sig[:, 3 * H:4 * H]
            c_new = f * c + i * g
            h_new = o * jnp.tanh(c_new)
            seq_s[pl.ds(row, BB), :] = h_new   # store is off the dep chain
            return h_new, c_new

        h0 = jnp.zeros((BB, H), f32)
        c0 = jnp.zeros((BB, H), f32)
        _ = lax.fori_loop(0, T, step, (h0, c0), unroll=True)

    # ---- LSTM layer 0: hoisted (T*BB, D) @ (D, 4H) projection, then recur ----
    pre_s[...] = (jnp.dot(x_ref[...], wih0_ref[...],
                          preferred_element_type=f32) + b0_ref[...])
    run_recurrence(whh0_ref[...])

    # ---- LSTM layer 1: hoisted projection over the full layer-0 sequence -----
    pre_s[...] = (jnp.dot(seq_s[...], wih1_ref[...],
                          preferred_element_type=f32) + b1_ref[...])
    run_recurrence(whh1_ref[...])

    # ---- flatten -> Linear, off the critical path, lane-dense accumulator ----
    def fc_step(t, acc):
        row = pl.multiple_of(t * BB, BB)
        return acc + jnp.dot(seq_s[pl.ds(row, BB), :], wfc_ref[t],
                             preferred_element_type=f32)

    acc = lax.fori_loop(0, T, fc_step, jnp.zeros((BB, Cp), f32), unroll=True)
    out_ref[...] = acc + bfc_ref[...]


def rnn_forward(x, params, *, batch_block=_SUBLANE):
    """x: (B, T, D) batch-first, float32.  Returns (B, num_classes)."""
    B, T, D = x.shape
    H = params["w_hh0"].shape[1]
    C = params["b_fc"].shape[0]
    G = 4 * H

    BB = batch_block
    B_pad = ((B + BB - 1) // BB) * BB
    nB = B_pad // BB
    Cp = ((C + _LANE - 1) // _LANE) * _LANE     # lane-dense output width

    # Pad batch to a full sublane tile and group into per-grid-step blocks.
    # Rows inside a block are (t, b_local) time-major so the kernel never
    # needs a value reshape.
    xp = jnp.pad(x.astype(jnp.float32), ((0, B_pad - B), (0, 0), (0, 0)))
    x_grp = (xp.transpose(1, 0, 2)                       # (T, B_pad, D)
               .reshape(T, nB, BB, D)
               .transpose(1, 0, 2, 3)                    # (nB, T, BB, D)
               .reshape(nB, T * BB, D))

    # Note: on v6e/v7x these weight operands can be cast to bfloat16 for ~2x
    # MXU throughput (accumulation stays f32); kept f32 to match the reference.
    wih0 = params["w_ih0"].T                             # (D, 4H)
    whh0 = params["w_hh0"].T                             # (H, 4H)
    b0 = (params["b_ih0"] + params["b_hh0"]).reshape(1, G)
    wih1 = params["w_ih1"].T                             # (H, 4H)
    whh1 = params["w_hh1"].T                             # (H, 4H)
    b1 = (params["b_ih1"] + params["b_hh1"]).reshape(1, G)
    # fc weight (C, T*H): flatten index of (B, T, H) is t*H + h -> (T, H, C),
    # then lane-pad C up to Cp.
    wfc = params["w_fc"].reshape(C, T, H).transpose(1, 2, 0)
    wfc = jnp.pad(wfc, ((0, 0), (0, 0), (0, Cp - C)))
    bfc = jnp.pad(params["b_fc"], (0, Cp - C)).reshape(1, Cp)

    out = pl.pallas_call(
        _lstm_fc_kernel,
        out_shape=jax.ShapeDtypeStruct((B_pad, Cp), jnp.float32),
        grid=(nB,),
        in_specs=[
            pl.BlockSpec((None, T * BB, D), lambda g: (g, 0, 0)),  # x block
            pl.BlockSpec((D, G), lambda g: (0, 0)),                # wih0
            pl.BlockSpec((H, G), lambda g: (0, 0)),                # whh0
            pl.BlockSpec((1, G), lambda g: (0, 0)),                # b0
            pl.BlockSpec((H, G), lambda g: (0, 0)),                # wih1
            pl.BlockSpec((H, G), lambda g: (0, 0)),                # whh1
            pl.BlockSpec((1, G), lambda g: (0, 0)),                # b1
            pl.BlockSpec((T, H, Cp), lambda g: (0, 0, 0)),         # wfc
            pl.BlockSpec((1, Cp), lambda g: (0, 0)),               # bfc
        ],
        out_specs=pl.BlockSpec((BB, Cp), lambda g: (g, 0)),
        scratch_shapes=[
            pltpu.VMEM((T * BB, G), jnp.float32),   # gate pre-activations
            pltpu.VMEM((T * BB, H), jnp.float32),   # layer output sequence
        ],
        compiler_params=pltpu.CompilerParams(
            dimension_semantics=("parallel",)),
    )(x_grp, wih0, whh0, b0, wih1, whh1, b1, wfc, bfc)

    return out[:B, :C]


def rnn_reference(x, params):
    """Pure-JAX reference mirroring torch.nn.LSTM(num_layers=2) + Linear."""
    B, T, _ = x.shape
    H = params["w_hh0"].shape[1]

    def run_layer(inp, w_ih, w_hh, b):
        h = jnp.zeros((B, H), jnp.float32)
        c = jnp.zeros((B, H), jnp.float32)
        outs = []
        for t in range(T):
            g = inp[:, t, :] @ w_ih.T + h @ w_hh.T + b
            i = jax.nn.sigmoid(g[:, :H])
            f = jax.nn.sigmoid(g[:, H:2 * H])
            gg = jnp.tanh(g[:, 2 * H:3 * H])
            o = jax.nn.sigmoid(g[:, 3 * H:])
            c = f * c + i * gg
            h = o * jnp.tanh(c)
            outs.append(h)
        return jnp.stack(outs, axis=1)  # (B, T, H)

    o1 = run_layer(x, params["w_ih0"], params["w_hh0"],
                   params["b_ih0"] + params["b_hh0"])
    o2 = run_layer(o1, params["w_ih1"], params["w_hh1"],
                   params["b_ih1"] + params["b_hh1"])
    flat = o2.reshape(B, -1)
    return flat @ params["w_fc"].T + params["b_fc"]


def make_params(key, input_size, hidden_size, seq_len, num_classes):
    ks = jax.random.split(key, 10)
    u = lambda k, shape, s=0.1: jax.random.uniform(k, shape, jnp.float32, -s, s)
    H, D, T, C = hidden_size, input_size, seq_len, num_classes
    return {
        "w_ih0": u(ks[0], (4 * H, D)),
        "w_hh0": u(ks[1], (4 * H, H)),
        "b_ih0": u(ks[2], (4 * H,)),
        "b_hh0": u(ks[3], (4 * H,)),
        "w_ih1": u(ks[4], (4 * H, H)),
        "w_hh1": u(ks[5], (4 * H, H)),
        "b_ih1": u(ks[6], (4 * H,)),
        "b_hh1": u(ks[7], (4 * H,)),
        "w_fc":  u(ks[8], (C, H * T)),
        "b_fc":  u(ks[9], (C,)),
    }


if __name__ == "__main__":
    # Small shapes consistent with the module (batch_first (B, T, D) input):
    B, T, D, H, C = 2, 8, 16, 32, 10

    key = jax.random.PRNGKey(0)
    kx, kp = jax.random.split(key)
    x = jax.random.normal(kx, (B, T, D), jnp.float32)
    params = make_params(kp, D, H, T, C)

    out = jax.block_until_ready(rnn_forward(x, params))
    ref = jax.block_until_ready(rnn_reference(x, params))

    assert out.shape == (B, C), out.shape
    assert jnp.allclose(out, ref, atol=1e-4, rtol=1e-4), (
        f"max abs err {jnp.max(jnp.abs(out - ref))}")
    print("KERNEL_OK")
</pallas_src>

<mosaic_0001>
module attributes {stable_mosaic.version = 11 : i64} {
  func.func @_lstm_fc_kernel(%arg0: i32, %arg1: memref<1x64x16xf32, #tpu.memory_space<vmem>>, %arg2: memref<16x128xf32, #tpu.memory_space<vmem>>, %arg3: memref<32x128xf32, #tpu.memory_space<vmem>>, %arg4: memref<1x128xf32, #tpu.memory_space<vmem>>, %arg5: memref<32x128xf32, #tpu.memory_space<vmem>>, %arg6: memref<32x128xf32, #tpu.memory_space<vmem>>, %arg7: memref<1x128xf32, #tpu.memory_space<vmem>>, %arg8: memref<8x32x128xf32, #tpu.memory_space<vmem>>, %arg9: memref<1x128xf32, #tpu.memory_space<vmem>>, %arg10: memref<8x128xf32, #tpu.memory_space<vmem>>, %arg11: memref<64x128xf32, #tpu.memory_space<vmem>>, %arg12: memref<64x32xf32, #tpu.memory_space<vmem>>) attributes {dimension_semantics = [#tpu.dimension_semantics<parallel>], iteration_bounds = array<i64: 1>, scalar_prefetch = 0 : i64, scratch_operands = 2 : i64, tpu.core_type = #tpu.core_type<tc>, window_params = [{transform_indices = @transform_0, window_bounds = array<i64: 1, 64, 16>}, {pipeline_mode = #tpu.pipeline_mode<synchronous>, transform_indices = @transform_1, window_bounds = array<i64: 16, 128>}, {pipeline_mode = #tpu.pipeline_mode<synchronous>, transform_indices = @transform_2, window_bounds = array<i64: 32, 128>}, {pipeline_mode = #tpu.pipeline_mode<synchronous>, transform_indices = @transform_3, window_bounds = array<i64: 1, 128>}, {pipeline_mode = #tpu.pipeline_mode<synchronous>, transform_indices = @transform_4, window_bounds = array<i64: 32, 128>}, {pipeline_mode = #tpu.pipeline_mode<synchronous>, transform_indices = @transform_5, window_bounds = array<i64: 32, 128>}, {pipeline_mode = #tpu.pipeline_mode<synchronous>, transform_indices = @transform_6, window_bounds = array<i64: 1, 128>}, {pipeline_mode = #tpu.pipeline_mode<synchronous>, transform_indices = @transform_7, window_bounds = array<i64: 8, 32, 128>}, {pipeline_mode = #tpu.pipeline_mode<synchronous>, transform_indices = @transform_8, window_bounds = array<i64: 1, 128>}, {transform_indices = @transform_9, window_bounds = array<i64: 8, 128>}]} {
    %c0 = arith.constant 0 : index
    %c0_0 = arith.constant 0 : index
    %c0_1 = arith.constant 0 : index
    %0 = vector.load %arg1[%c0, %c0_0, %c0_1] : memref<1x64x16xf32, #tpu.memory_space<vmem>>, vector<1x64x16xf32>
    %1 = vector.shape_cast %0 : vector<1x64x16xf32> to vector<64x16xf32>
    %c0_2 = arith.constant 0 : index
    %c0_3 = arith.constant 0 : index
    %2 = vector.load %arg2[%c0_2, %c0_3] : memref<16x128xf32, #tpu.memory_space<vmem>>, vector<16x128xf32>
    %cst = arith.constant dense<0.000000e+00> : vector<64x128xf32>
    %3 = tpu.matmul %1, %2, %cst {dimension_numbers = #tpu.dot_dimension_numbers<[1], [0], [0], [1], [0, 0, 1, 1], [], []>} : vector<64x16xf32>, vector<16x128xf32>, vector<64x128xf32> -> vector<64x128xf32>
    %c0_4 = arith.constant 0 : index
    %c0_5 = arith.constant 0 : index
    %4 = vector.load %arg4[%c0_4, %c0_5] : memref<1x128xf32, #tpu.memory_space<vmem>>, vector<1x128xf32>
    %5 = vector.broadcast %4 : vector<1x128xf32> to vector<64x128xf32>
    %6 = arith.addf %3, %5 : vector<64x128xf32>
    %c0_6 = arith.constant 0 : index
    %c0_7 = arith.constant 0 : index
    %7 = vector.load %arg11[%c0_6, %c0_7] : memref<64x128xf32, #tpu.memory_space<vmem>>, vector<64x128xf32>
    tpu.vector_store %arg11[%c0_6, %c0_7], %6 {strides = array<i32>} : memref<64x128xf32, #tpu.memory_space<vmem>>, vector<64x128xf32>,
    %c0_8 = arith.constant 0 : index
    %c0_9 = arith.constant 0 : index
    %8 = vector.load %arg3[%c0_8, %c0_9] : memref<32x128xf32, #tpu.memory_space<vmem>>, vector<32x128xf32>
    %cst_10 = arith.constant 0.000000e+00 : f32
    %9 = vector.broadcast %cst_10 : f32 to vector<8x32xf32>
    %cst_11 = arith.constant 0.000000e+00 : f32
    %10 = vector.broadcast %cst_11 : f32 to vector<8x32xf32>
    %c0_i32 = arith.constant 0 : i32
    %c8_i32 = arith.constant 8 : i32
    %11 = arith.muli %c0_i32, %c8_i32 : i32
    %12 = tpu.assume_multiple %11, 8 : i32
    %13 = arith.index_cast %12 : i32 to index
    %c0_12 = arith.constant 0 : index
    %14 = vector.load %arg11[%13, %c0_12] : memref<64x128xf32, #tpu.memory_space<vmem>>, vector<8x128xf32>
    %cst_13 = arith.constant dense<0.000000e+00> : vector<8x128xf32>
    %15 = tpu.matmul %9, %8, %cst_13 {dimension_numbers = #tpu.dot_dimension_numbers<[1], [0], [0], [1], [0, 0, 1, 1], [], []>} : vector<8x32xf32>, vector<32x128xf32>, vector<8x128xf32> -> vector<8x128xf32>
    %16 = arith.addf %14, %15 : vector<8x128xf32>
    %17 = arith.negf %16 : vector<8x128xf32>
    %18 = math.exp %17 : vector<8x128xf32>
    %cst_14 = arith.constant 1.000000e+00 : f32
    %19 = vector.broadcast %cst_14 : f32 to vector<8x128xf32>
    %20 = arith.addf %19, %18 : vector<8x128xf32>
    %21 = arith.divf %19, %20 : vector<8x128xf32>
    %22 = math.tanh %16 : vector<8x128xf32>
    %23 = vector.extract_strided_slice %21 {offsets = [0, 0], sizes = [8, 32], strides = [1, 1]} : vector<8x128xf32> to vector<8x32xf32>
    %24 = vector.extract_strided_slice %21 {offsets = [0, 32], sizes = [8, 32], strides = [1, 1]} : vector<8x128xf32> to vector<8x32xf32>
    %25 = vector.extract_strided_slice %22 {offsets = [0, 64], sizes = [8, 32], strides = [1, 1]} : vector<8x128xf32> to vector<8x32xf32>
    %26 = vector.extract_strided_slice %21 {offsets = [0, 96], sizes = [8, 32], strides = [1, 1]} : vector<8x128xf32> to vector<8x32xf32>
    %27 = arith.mulf %24, %10 : vector<8x32xf32>
    %28 = arith.mulf %23, %25 : vector<8x32xf32>
    %29 = arith.addf %27, %28 : vector<8x32xf32>
    %30 = math.tanh %29 : vector<8x32xf32>
    %31 = arith.mulf %26, %30 : vector<8x32xf32>
    %32 = arith.index_cast %12 : i32 to index
    %c0_15 = arith.constant 0 : index
    %33 = vector.load %arg12[%32, %c0_15] : memref<64x32xf32, #tpu.memory_space<vmem>>, vector<8x32xf32>
    tpu.vector_store %arg12[%32, %c0_15], %31 {strides = array<i32>} : memref<64x32xf32, #tpu.memory_space<vmem>>, vector<8x32xf32>,
    %c1_i32 = arith.constant 1 : i32
    %c8_i32_16 = arith.constant 8 : i32
    %34 = arith.muli %c1_i32, %c8_i32_16 : i32
    %35 = tpu.assume_multiple %34, 8 : i32
    %36 = arith.index_cast %35 : i32 to index
    %c0_17 = arith.constant 0 : index
    %37 = vector.load %arg11[%36, %c0_17] : memref<64x128xf32, #tpu.memory_space<vmem>>, vector<8x128xf32>
    %cst_18 = arith.constant dense<0.000000e+00> : vector<8x128xf32>
    %38 = tpu.matmul %31, %8, %cst_18 {dimension_numbers = #tpu.dot_dimension_numbers<[1], [0], [0], [1], [0, 0, 1, 1], [], []>} : vector<8x32xf32>, vector<32x128xf32>, vector<8x128xf32> -> vector<8x128xf32>
    %39 = arith.addf %37, %38 : vector<8x128xf32>
    %40 = arith.negf %39 : vector<8x128xf32>
    %41 = math.exp %40 : vector<8x128xf32>
    %cst_19 = arith.constant 1.000000e+00 : f32
    %42 = vector.broadcast %cst_19 : f32 to vector<8x128xf32>
    %43 = arith.addf %42, %41 : vector<8x128xf32>
    %44 = arith.divf %42, %43 : vector<8x128xf32>
    %45 = math.tanh %39 : vector<8x128xf32>
    %46 = vector.extract_strided_slice %44 {offsets = [0, 0], sizes = [8, 32], strides = [1, 1]} : vector<8x128xf32> to vector<8x32xf32>
    %47 = vector.extract_strided_slice %44 {offsets = [0, 32], sizes = [8, 32], strides = [1, 1]} : vector<8x128xf32> to vector<8x32xf32>
    %48 = vector.extract_strided_slice %45 {offsets = [0, 64], sizes = [8, 32], strides = [1, 1]} : vector<8x128xf32> to vector<8x32xf32>
    %49 = vector.extract_strided_slice %44 {offsets = [0, 96], sizes = [8, 32], strides = [1, 1]} : vector<8x128xf32> to vector<8x32xf32>
    %50 = arith.mulf %47, %29 : vector<8x32xf32>
    %51 = arith.mulf %46, %48 : vector<8x32xf32>
    %52 = arith.addf %50, %51 : vector<8x32xf32>
    %53 = math.tanh %52 : vector<8x32xf32>
    %54 = arith.mulf %49, %53 : vector<8x32xf32>
    %55 = arith.index_cast %35 : i32 to index
    %c0_20 = arith.constant 0 : index
    %56 = vector.load %arg12[%55, %c0_20] : memref<64x32xf32, #tpu.memory_space<vmem>>, vector<8x32xf32>
    tpu.vector_store %arg12[%55, %c0_20], %54 {strides = array<i32>} : memref<64x32xf32, #tpu.memory_space<vmem>>, vector<8x32xf32>,
    %c2_i32 = arith.constant 2 : i32
    %c8_i32_21 = arith.constant 8 : i32
    %57 = arith.muli %c2_i32, %c8_i32_21 : i32
    %58 = tpu.assume_multiple %57, 8 : i32
    %59 = arith.index_cast %58 : i32 to index
    %c0_22 = arith.constant 0 : index
    %60 = vector.load %arg11[%59, %c0_22] : memref<64x128xf32, #tpu.memory_space<vmem>>, vector<8x128xf32>
    %cst_23 = arith.constant dense<0.000000e+00> : vector<8x128xf32>
    %61 = tpu.matmul %54, %8, %cst_23 {dimension_numbers = #tpu.dot_dimension_numbers<[1], [0], [0], [1], [0, 0, 1, 1], [], []>} : vector<8x32xf32>, vector<32x128xf32>, vector<8x128xf32> -> vector<8x128xf32>
    %62 = arith.addf %60, %61 : vector<8x128xf32>
    %63 = arith.negf %62 : vector<8x128xf32>
    %64 = math.exp %63 : vector<8x128xf32>
    %cst_24 = arith.constant 1.000000e+00 : f32
    %65 = vector.broadcast %cst_24 : f32 to vector<8x128xf32>
    %66 = arith.addf %65, %64 : vector<8x128xf32>
    %67 = arith.divf %65, %66 : vector<8x128xf32>
    %68 = math.tanh %62 : vector<8x128xf32>
    %69 = vector.extract_strided_slice %67 {offsets = [0, 0], sizes = [8, 32], strides = [1, 1]} : vector<8x128xf32> to vector<8x32xf32>
    %70 = vector.extract_strided_slice %67 {offsets = [0, 32], sizes = [8, 32], strides = [1, 1]} : vector<8x128xf32> to vector<8x32xf32>
    %71 = vector.extract_strided_slice %68 {offsets = [0, 64], sizes = [8, 32], strides = [1, 1]} : vector<8x128xf32> to vector<8x32xf32>
    %72 = vector.extract_strided_slice %67 {offsets = [0, 96], sizes = [8, 32], strides = [1, 1]} : vector<8x128xf32> to vector<8x32xf32>
    %73 = arith.mulf %70, %52 : vector<8x32xf32>
    %74 = arith.mulf %69, %71 : vector<8x32xf32>
    %75 = arith.addf %73, %74 : vector<8x32xf32>
    %76 = math.tanh %75 : vector<8x32xf32>
    %77 = arith.mulf %72, %76 : vector<8x32xf32>
    %78 = arith.index_cast %58 : i32 to index
    %c0_25 = arith.constant 0 : index
    %79 = vector.load %arg12[%78, %c0_25] : memref<64x32xf32, #tpu.memory_space<vmem>>, vector<8x32xf32>
    tpu.vector_store %arg12[%78, %c0_25], %77 {strides = array<i32>} : memref<64x32xf32, #tpu.memory_space<vmem>>, vector<8x32xf32>,
    %c3_i32 = arith.constant 3 : i32
    %c8_i32_26 = arith.constant 8 : i32
    %80 = arith.muli %c3_i32, %c8_i32_26 : i32
    %81 = tpu.assume_multiple %80, 8 : i32
    %82 = arith.index_cast %81 : i32 to index
    %c0_27 = arith.constant 0 : index
    %83 = vector.load %arg11[%82, %c0_27] : memref<64x128xf32, #tpu.memory_space<vmem>>, vector<8x128xf32>
    %cst_28 = arith.constant dense<0.000000e+00> : vector<8x128xf32>
    %84 = tpu.matmul %77, %8, %cst_28 {dimension_numbers = #tpu.dot_dimension_numbers<[1], [0], [0], [1], [0, 0, 1, 1], [], []>} : vector<8x32xf32>, vector<32x128xf32>, vector<8x128xf32> -> vector<8x128xf32>
    %85 = arith.addf %83, %84 : vector<8x128xf32>
    %86 = arith.negf %85 : vector<8x128xf32>
    %87 = math.exp %86 : vector<8x128xf32>
    %cst_29 = arith.constant 1.000000e+00 : f32
    %88 = vector.broadcast %cst_29 : f32 to vector<8x128xf32>
    %89 = arith.addf %88, %87 : vector<8x128xf32>
    %90 = arith.divf %88, %89 : vector<8x128xf32>
    %91 = math.tanh %85 : vector<8x128xf32>
    %92 = vector.extract_strided_slice %90 {offsets = [0, 0], sizes = [8, 32], strides = [1, 1]} : vector<8x128xf32> to vector<8x32xf32>
    %93 = vector.extract_strided_slice %90 {offsets = [0, 32], sizes = [8, 32], strides = [1, 1]} : vector<8x128xf32> to vector<8x32xf32>
    %94 = vector.extract_strided_slice %91 {offsets = [0, 64], sizes = [8, 32], strides = [1, 1]} : vector<8x128xf32> to vector<8x32xf32>
    %95 = vector.extract_strided_slice %90 {offsets = [0, 96], sizes = [8, 32], strides = [1, 1]} : vector<8x128xf32> to vector<8x32xf32>
    %96 = arith.mulf %93, %75 : vector<8x32xf32>
    %97 = arith.mulf %92, %94 : vector<8x32xf32>
    %98 = arith.addf %96, %97 : vector<8x32xf32>
    %99 = math.tanh %98 : vector<8x32xf32>
    %100 = arith.mulf %95, %99 : vector<8x32xf32>
    %101 = arith.index_cast %81 : i32 to index
    %c0_30 = arith.constant 0 : index
    %102 = vector.load %arg12[%101, %c0_30] : memref<64x32xf32, #tpu.memory_space<vmem>>, vector<8x32xf32>
    tpu.vector_store %arg12[%101, %c0_30], %100 {strides = array<i32>} : memref<64x32xf32, #tpu.memory_space<vmem>>, vector<8x32xf32>,
    %c4_i32 = arith.constant 4 : i32
    %c8_i32_31 = arith.constant 8 : i32
    %103 = arith.muli %c4_i32, %c8_i32_31 : i32
    %104 = tpu.assume_multiple %103, 8 : i32
    %105 = arith.index_cast %104 : i32 to index
    %c0_32 = arith.constant 0 : index
    %106 = vector.load %arg11[%105, %c0_32] : memref<64x128xf32, #tpu.memory_space<vmem>>, vector<8x128xf32>
    %cst_33 = arith.constant dense<0.000000e+00> : vector<8x128xf32>
    %107 = tpu.matmul %100, %8, %cst_33 {dimension_numbers = #tpu.dot_dimension_numbers<[1], [0], [0], [1], [0, 0, 1, 1], [], []>} : vector<8x32xf32>, vector<32x128xf32>, vector<8x128xf32> -> vector<8x128xf32>
    %108 = arith.addf %106, %107 : vector<8x128xf32>
    %109 = arith.negf %108 : vector<8x128xf32>
    %110 = math.exp %109 : vector<8x128xf32>
    %cst_34 = arith.constant 1.000000e+00 : f32
    %111 = vector.broadcast %cst_34 : f32 to vector<8x128xf32>
    %112 = arith.addf %111, %110 : vector<8x128xf32>
    %113 = arith.divf %111, %112 : vector<8x128xf32>
    %114 = math.tanh %108 : vector<8x128xf32>
    %115 = vector.extract_strided_slice %113 {offsets = [0, 0], sizes = [8, 32], strides = [1, 1]} : vector<8x128xf32> to vector<8x32xf32>
    %116 = vector.extract_strided_slice %113 {offsets = [0, 32], sizes = [8, 32], strides = [1, 1]} : vector<8x128xf32> to vector<8x32xf32>
    %117 = vector.extract_strided_slice %114 {offsets = [0, 64], sizes = [8, 32], strides = [1, 1]} : vector<8x128xf32> to vector<8x32xf32>
    %118 = vector.extract_strided_slice %113 {offsets = [0, 96], sizes = [8, 32], strides = [1, 1]} : vector<8x128xf32> to vector<8x32xf32>
    %119 = arith.mulf %116, %98 : vector<8x32xf32>
    %120 = arith.mulf %115, %117 : vector<8x32xf32>
    %121 = arith.addf %119, %120 : vector<8x32xf32>
    %122 = math.tanh %121 : vector<8x32xf32>
    %123 = arith.mulf %118, %122 : vector<8x32xf32>
    %124 = arith.index_cast %104 : i32 to index
    %c0_35 = arith.constant 0 : index
    %125 = vector.load %arg12[%124, %c0_35] : memref<64x32xf32, #tpu.memory_space<vmem>>, vector<8x32xf32>
    tpu.vector_store %arg12[%124, %c0_35], %123 {strides = array<i32>} : memref<64x32xf32, #tpu.memory_space<vmem>>, vector<8x32xf32>,
    %c5_i32 = arith.constant 5 : i32
    %c8_i32_36 = arith.constant 8 : i32
    %126 = arith.muli %c5_i32, %c8_i32_36 : i32
    %127 = tpu.assume_multiple %126, 8 : i32
    %128 = arith.index_cast %127 : i32 to index
    %c0_37 = arith.constant 0 : index
    %129 = vector.load %arg11[%128, %c0_37] : memref<64x128xf32, #tpu.memory_space<vmem>>, vector<8x128xf32>
    %cst_38 = arith.constant dense<0.000000e+00> : vector<8x128xf32>
    %130 = tpu.matmul %123, %8, %cst_38 {dimension_numbers = #tpu.dot_dimension_numbers<[1], [0], [0], [1], [0, 0, 1, 1], [], []>} : vector<8x32xf32>, vector<32x128xf32>, vector<8x128xf32> -> vector<8x128xf32>
    %131 = arith.addf %129, %130 : vector<8x128xf32>
    %132 = arith.negf %131 : vector<8x128xf32>
    %133 = math.exp %132 : vector<8x128xf32>
    %cst_39 = arith.constant 1.000000e+00 : f32
    %134 = vector.broadcast %cst_39 : f32 to vector<8x128xf32>
    %135 = arith.addf %134, %133 : vector<8x128xf32>
    %136 = arith.divf %134, %135 : vector<8x128xf32>
    %137 = math.tanh %131 : vector<8x128xf32>
    %138 = vector.extract_strided_slice %136 {offsets = [0, 0], sizes = [8, 32], strides = [1, 1]} : vector<8x128xf32> to vector<8x32xf32>
    %139 = vector.extract_strided_slice %136 {offsets = [0, 32], sizes = [8, 32], strides = [1, 1]} : vector<8x128xf32> to vector<8x32xf32>
    %140 = vector.extract_strided_slice %137 {offsets = [0, 64], sizes = [8, 32], strides = [1, 1]} : vector<8x128xf32> to vector<8x32xf32>
    %141 = vector.extract_strided_slice %136 {offsets = [0, 96], sizes = [8, 32], strides = [1, 1]} : vector<8x128xf32> to vector<8x32xf32>
    %142 = arith.mulf %139, %121 : vector<8x32xf32>
    %143 = arith.mulf %138, %140 : vector<8x32xf32>
    %144 = arith.addf %142, %143 : vector<8x32xf32>
    %145 = math.tanh %144 : vector<8x32xf32>
    %146 = arith.mulf %141, %145 : vector<8x32xf32>
    %147 = arith.index_cast %127 : i32 to index
    %c0_40 = arith.constant 0 : index
    %148 = vector.load %arg12[%147, %c0_40] : memref<64x32xf32, #tpu.memory_space<vmem>>, vector<8x32xf32>
    tpu.vector_store %arg12[%147, %c0_40], %146 {strides = array<i32>} : memref<64x32xf32, #tpu.memory_space<vmem>>, vector<8x32xf32>,
    %c6_i32 = arith.constant 6 : i32
    %c8_i32_41 = arith.constant 8 : i32
    %149 = arith.muli %c6_i32, %c8_i32_41 : i32
    %150 = tpu.assume_multiple %149, 8 : i32
    %151 = arith.index_cast %150 : i32 to index
    %c0_42 = arith.constant 0 : index
    %152 = vector.load %arg11[%151, %c0_42] : memref<64x128xf32, #tpu.memory_space<vmem>>, vector<8x128xf32>
    %cst_43 = arith.constant dense<0.000000e+00> : vector<8x128xf32>
    %153 = tpu.matmul %146, %8, %cst_43 {dimension_numbers = #tpu.dot_dimension_numbers<[1], [0], [0], [1], [0, 0, 1, 1], [], []>} : vector<8x32xf32>, vector<32x128xf32>, vector<8x128xf32> -> vector<8x128xf32>
    %154 = arith.addf %152, %153 : vector<8x128xf32>
    %155 = arith.negf %154 : vector<8x128xf32>
    %156 = math.exp %155 : vector<8x128xf32>
    %cst_44 = arith.constant 1.000000e+00 : f32
    %157 = vector.broadcast %cst_44 : f32 to vector<8x128xf32>
    %158 = arith.addf %157, %156 : vector<8x128xf32>
    %159 = arith.divf %157, %158 : vector<8x128xf32>
    %160 = math.tanh %154 : vector<8x128xf32>
    %161 = vector.extract_strided_slice %159 {offsets = [0, 0], sizes = [8, 32], strides = [1, 1]} : vector<8x128xf32> to vector<8x32xf32>
    %162 = vector.extract_strided_slice %159 {offsets = [0, 32], sizes = [8, 32], strides = [1, 1]} : vector<8x128xf32> to vector<8x32xf32>
    %163 = vector.extract_strided_slice %160 {offsets = [0, 64], sizes = [8, 32], strides = [1, 1]} : vector<8x128xf32> to vector<8x32xf32>
    %164 = vector.extract_strided_slice %159 {offsets = [0, 96], sizes = [8, 32], strides = [1, 1]} : vector<8x128xf32> to vector<8x32xf32>
    %165 = arith.mulf %162, %144 : vector<8x32xf32>
    %166 = arith.mulf %161, %163 : vector<8x32xf32>
    %167 = arith.addf %165, %166 : vector<8x32xf32>
    %168 = math.tanh %167 : vector<8x32xf32>
    %169 = arith.mulf %164, %168 : vector<8x32xf32>
    %170 = arith.index_cast %150 : i32 to index
    %c0_45 = arith.constant 0 : index
    %171 = vector.load %arg12[%170, %c0_45] : memref<64x32xf32, #tpu.memory_space<vmem>>, vector<8x32xf32>
    tpu.vector_store %arg12[%170, %c0_45], %169 {strides = array<i32>} : memref<64x32xf32, #tpu.memory_space<vmem>>, vector<8x32xf32>,
    %c7_i32 = arith.constant 7 : i32
    %c8_i32_46 = arith.constant 8 : i32
    %172 = arith.muli %c7_i32, %c8_i32_46 : i32
    %173 = tpu.assume_multiple %172, 8 : i32
    %174 = arith.index_cast %173 : i32 to index
    %c0_47 = arith.constant 0 : index
    %175 = vector.load %arg11[%174, %c0_47] : memref<64x128xf32, #tpu.memory_space<vmem>>, vector<8x128xf32>
    %cst_48 = arith.constant dense<0.000000e+00> : vector<8x128xf32>
    %176 = tpu.matmul %169, %8, %cst_48 {dimension_numbers = #tpu.dot_dimension_numbers<[1], [0], [0], [1], [0, 0, 1, 1], [], []>} : vector<8x32xf32>, vector<32x128xf32>, vector<8x128xf32> -> vector<8x128xf32>
    %177 = arith.addf %175, %176 : vector<8x128xf32>
    %178 = arith.negf %177 : vector<8x128xf32>
    %179 = math.exp %178 : vector<8x128xf32>
    %cst_49 = arith.constant 1.000000e+00 : f32
    %180 = vector.broadcast %cst_49 : f32 to vector<8x128xf32>
    %181 = arith.addf %180, %179 : vector<8x128xf32>
    %182 = arith.divf %180, %181 : vector<8x128xf32>
    %183 = math.tanh %177 : vector<8x128xf32>
    %184 = vector.extract_strided_slice %182 {offsets = [0, 0], sizes = [8, 32], strides = [1, 1]} : vector<8x128xf32> to vector<8x32xf32>
    %185 = vector.extract_strided_slice %182 {offsets = [0, 32], sizes = [8, 32], strides = [1, 1]} : vector<8x128xf32> to vector<8x32xf32>
    %186 = vector.extract_strided_slice %183 {offsets = [0, 64], sizes = [8, 32], strides = [1, 1]} : vector<8x128xf32> to vector<8x32xf32>
    %187 = vector.extract_strided_slice %182 {offsets = [0, 96], sizes = [8, 32], strides = [1, 1]} : vector<8x128xf32> to vector<8x32xf32>
    %188 = arith.mulf %185, %167 : vector<8x32xf32>
    %189 = arith.mulf %184, %186 : vector<8x32xf32>
    %190 = arith.addf %188, %189 : vector<8x32xf32>
    %191 = math.tanh %190 : vector<8x32xf32>
    %192 = arith.mulf %187, %191 : vector<8x32xf32>
    %193 = arith.index_cast %173 : i32 to index
    %c0_50 = arith.constant 0 : index
    %194 = vector.load %arg12[%193, %c0_50] : memref<64x32xf32, #tpu.memory_space<vmem>>, vector<8x32xf32>
    tpu.vector_store %arg12[%193, %c0_50], %192 {strides = array<i32>} : memref<64x32xf32, #tpu.memory_space<vmem>>, vector<8x32xf32>,
    %c8_i32_51 = arith.constant 8 : i32
    %c0_52 = arith.constant 0 : index
    %c0_53 = arith.constant 0 : index
    %195 = vector.load %arg12[%c0_52, %c0_53] : memref<64x32xf32, #tpu.memory_space<vmem>>, vector<64x32xf32>
    %c0_54 = arith.constant 0 : index
    %c0_55 = arith.constant 0 : index
    %196 = vector.load %arg5[%c0_54, %c0_55] : memref<32x128xf32, #tpu.memory_space<vmem>>, vector<32x128xf32>
    %cst_56 = arith.constant dense<0.000000e+00> : vector<64x128xf32>
    %197 = tpu.matmul %195, %196, %cst_56 {dimension_numbers = #tpu.dot_dimension_numbers<[1], [0], [0], [1], [0, 0, 1, 1], [], []>} : vector<64x32xf32>, vector<32x128xf32>, vector<64x128xf32> -> vector<64x128xf32>
    %c0_57 = arith.constant 0 : index
    %c0_58 = arith.constant 0 : index
    %198 = vector.load %arg7[%c0_57, %c0_58] : memref<1x128xf32, #tpu.memory_space<vmem>>, vector<1x128xf32>
    %199 = vector.broadcast %198 : vector<1x128xf32> to vector<64x128xf32>
    %200 = arith.addf %197, %199 : vector<64x128xf32>
    %c0_59 = arith.constant 0 : index
    %c0_60 = arith.constant 0 : index
    %201 = vector.load %arg11[%c0_59, %c0_60] : memref<64x128xf32, #tpu.memory_space<vmem>>, vector<64x128xf32>
    tpu.vector_store %arg11[%c0_59, %c0_60], %200 {strides = array<i32>} : memref<64x128xf32, #tpu.memory_space<vmem>>, vector<64x128xf32>,
    %c0_61 = arith.constant 0 : index
    %c0_62 = arith.constant 0 : index
    %202 = vector.load %arg6[%c0_61, %c0_62] : memref<32x128xf32, #tpu.memory_space<vmem>>, vector<32x128xf32>
    %cst_63 = arith.constant 0.000000e+00 : f32
    %203 = vector.broadcast %cst_63 : f32 to vector<8x32xf32>
    %cst_64 = arith.constant 0.000000e+00 : f32
    %204 = vector.broadcast %cst_64 : f32 to vector<8x32xf32>
    %c0_i32_65 = arith.constant 0 : i32
    %c8_i32_66 = arith.constant 8 : i32
    %205 = arith.muli %c0_i32_65, %c8_i32_66 : i32
    %206 = tpu.assume_multiple %205, 8 : i32
    %207 = arith.index_cast %206 : i32 to index
    %c0_67 = arith.constant 0 : index
    %208 = vector.load %arg11[%207, %c0_67] : memref<64x128xf32, #tpu.memory_space<vmem>>, vector<8x128xf32>
    %cst_68 = arith.constant dense<0.000000e+00> : vector<8x128xf32>
    %209 = tpu.matmul %203, %202, %cst_68 {dimension_numbers = #tpu.dot_dimension_numbers<[1], [0], [0], [1], [0, 0, 1, 1], [], []>} : vector<8x32xf32>, vector<32x128xf32>, vector<8x128xf32> -> vector<8x128xf32>
    %210 = arith.addf %208, %209 : vector<8x128xf32>
    %211 = arith.negf %210 : vector<8x128xf32>
    %212 = math.exp %211 : vector<8x128xf32>
    %cst_69 = arith.constant 1.000000e+00 : f32
    %213 = vector.broadcast %cst_69 : f32 to vector<8x128xf32>
    %214 = arith.addf %213, %212 : vector<8x128xf32>
    %215 = arith.divf %213, %214 : vector<8x128xf32>
    %216 = math.tanh %210 : vector<8x128xf32>
    %217 = vector.extract_strided_slice %215 {offsets = [0, 0], sizes = [8, 32], strides = [1, 1]} : vector<8x128xf32> to vector<8x32xf32>
    %218 = vector.extract_strided_slice %215 {offsets = [0, 32], sizes = [8, 32], strides = [1, 1]} : vector<8x128xf32> to vector<8x32xf32>
    %219 = vector.extract_strided_slice %216 {offsets = [0, 64], sizes = [8, 32], strides = [1, 1]} : vector<8x128xf32> to vector<8x32xf32>
    %220 = vector.extract_strided_slice %215 {offsets = [0, 96], sizes = [8, 32], strides = [1, 1]} : vector<8x128xf32> to vector<8x32xf32>
    %221 = arith.mulf %218, %204 : vector<8x32xf32>
    %222 = arith.mulf %217, %219 : vector<8x32xf32>
    %223 = arith.addf %221, %222 : vector<8x32xf32>
    %224 = math.tanh %223 : vector<8x32xf32>
    %225 = arith.mulf %220, %224 : vector<8x32xf32>
    %226 = arith.index_cast %206 : i32 to index
    %c0_70 = arith.constant 0 : index
    %227 = vector.load %arg12[%226, %c0_70] : memref<64x32xf32, #tpu.memory_space<vmem>>, vector<8x32xf32>
    tpu.vector_store %arg12[%226, %c0_70], %225 {strides = array<i32>} : memref<64x32xf32, #tpu.memory_space<vmem>>, vector<8x32xf32>,
    %c1_i32_71 = arith.constant 1 : i32
    %c8_i32_72 = arith.constant 8 : i32
    %228 = arith.muli %c1_i32_71, %c8_i32_72 : i32
    %229 = tpu.assume_multiple %228, 8 : i32
    %230 = arith.index_cast %229 : i32 to index
    %c0_73 = arith.constant 0 : index
    %231 = vector.load %arg11[%230, %c0_73] : memref<64x128xf32, #tpu.memory_space<vmem>>, vector<8x128xf32>
    %cst_74 = arith.constant dense<0.000000e+00> : vector<8x128xf32>
    %232 = tpu.matmul %225, %202, %cst_74 {dimension_numbers = #tpu.dot_dimension_numbers<[1], [0], [0], [1], [0, 0, 1, 1], [], []>} : vector<8x32xf32>, vector<32x128xf32>, vector<8x128xf32> -> vector<8x128xf32>
    %233 = arith.addf %231, %232 : vector<8x128xf32>
    %234 = arith.negf %233 : vector<8x128xf32>
    %235 = math.exp %234 : vector<8x128xf32>
    %cst_75 = arith.constant 1.000000e+00 : f32
    %236 = vector.broadcast %cst_75 : f32 to vector<8x128xf32>
    %237 = arith.addf %236, %235 : vector<8x128xf32>
    %238 = arith.divf %236, %237 : vector<8x128xf32>
    %239 = math.tanh %233 : vector<8x128xf32>
    %240 = vector.extract_strided_slice %238 {offsets = [0, 0], sizes = [8, 32], strides = [1, 1]} : vector<8x128xf32> to vector<8x32xf32>
    %241 = vector.extract_strided_slice %238 {offsets = [0, 32], sizes = [8, 32], strides = [1, 1]} : vector<8x128xf32> to vector<8x32xf32>
    %242 = vector.extract_strided_slice %239 {offsets = [0, 64], sizes = [8, 32], strides = [1, 1]} : vector<8x128xf32> to vector<8x32xf32>
    %243 = vector.extract_strided_slice %238 {offsets = [0, 96], sizes = [8, 32], strides = [1, 1]} : vector<8x128xf32> to vector<8x32xf32>
    %244 = arith.mulf %241, %223 : vector<8x32xf32>
    %245 = arith.mulf %240, %242 : vector<8x32xf32>
    %246 = arith.addf %244, %245 : vector<8x32xf32>
    %247 = math.tanh %246 : vector<8x32xf32>
    %248 = arith.mulf %243, %247 : vector<8x32xf32>
    %249 = arith.index_cast %229 : i32 to index
    %c0_76 = arith.constant 0 : index
    %250 = vector.load %arg12[%249, %c0_76] : memref<64x32xf32, #tpu.memory_space<vmem>>, vector<8x32xf32>
    tpu.vector_store %arg12[%249, %c0_76], %248 {strides = array<i32>} : memref<64x32xf32, #tpu.memory_space<vmem>>, vector<8x32xf32>,
    %c2_i32_77 = arith.constant 2 : i32
    %c8_i32_78 = arith.constant 8 : i32
    %251 = arith.muli %c2_i32_77, %c8_i32_78 : i32
    %252 = tpu.assume_multiple %251, 8 : i32
    %253 = arith.index_cast %252 : i32 to index
    %c0_79 = arith.constant 0 : index
    %254 = vector.load %arg11[%253, %c0_79] : memref<64x128xf32, #tpu.memory_space<vmem>>, vector<8x128xf32>
    %cst_80 = arith.constant dense<0.000000e+00> : vector<8x128xf32>
    %255 = tpu.matmul %248, %202, %cst_80 {dimension_numbers = #tpu.dot_dimension_numbers<[1], [0], [0], [1], [0, 0, 1, 1], [], []>} : vector<8x32xf32>, vector<32x128xf32>, vector<8x128xf32> -> vector<8x128xf32>
    %256 = arith.addf %254, %255 : vector<8x128xf32>
    %257 = arith.negf %256 : vector<8x128xf32>
    %258 = math.exp %257 : vector<8x128xf32>
    %cst_81 = arith.constant 1.000000e+00 : f32
    %259 = vector.broadcast %cst_81 : f32 to vector<8x128xf32>
    %260 = arith.addf %259, %258 : vector<8x128xf32>
    %261 = arith.divf %259, %260 : vector<8x128xf32>
    %262 = math.tanh %256 : vector<8x128xf32>
    %263 = vector.extract_strided_slice %261 {offsets = [0, 0], sizes = [8, 32], strides = [1, 1]} : vector<8x128xf32> to vector<8x32xf32>
    %264 = vector.extract_strided_slice %261 {offsets = [0, 32], sizes = [8, 32], strides = [1, 1]} : vector<8x128xf32> to vector<8x32xf32>
    %265 = vector.extract_strided_slice %262 {offsets = [0, 64], sizes = [8, 32], strides = [1, 1]} : vector<8x128xf32> to vector<8x32xf32>
    %266 = vector.extract_strided_slice %261 {offsets = [0, 96], sizes = [8, 32], strides = [1, 1]} : vector<8x128xf32> to vector<8x32xf32>
    %267 = arith.mulf %264, %246 : vector<8x32xf32>
    %268 = arith.mulf %263, %265 : vector<8x32xf32>
    %269 = arith.addf %267, %268 : vector<8x32xf32>
    %270 = math.tanh %269 : vector<8x32xf32>
    %271 = arith.mulf %266, %270 : vector<8x32xf32>
    %272 = arith.index_cast %252 : i32 to index
    %c0_82 = arith.constant 0 : index
    %273 = vector.load %arg12[%272, %c0_82] : memref<64x32xf32, #tpu.memory_space<vmem>>, vector<8x32xf32>
    tpu.vector_store %arg12[%272, %c0_82], %271 {strides = array<i32>} : memref<64x32xf32, #tpu.memory_space<vmem>>, vector<8x32xf32>,
    %c3_i32_83 = arith.constant 3 : i32
    %c8_i32_84 = arith.constant 8 : i32
    %274 = arith.muli %c3_i32_83, %c8_i32_84 : i32
    %275 = tpu.assume_multiple %274, 8 : i32
    %276 = arith.index_cast %275 : i32 to index
    %c0_85 = arith.constant 0 : index
    %277 = vector.load %arg11[%276, %c0_85] : memref<64x128xf32, #tpu.memory_space<vmem>>, vector<8x128xf32>
    %cst_86 = arith.constant dense<0.000000e+00> : vector<8x128xf32>
    %278 = tpu.matmul %271, %202, %cst_86 {dimension_numbers = #tpu.dot_dimension_numbers<[1], [0], [0], [1], [0, 0, 1, 1], [], []>} : vector<8x32xf32>, vector<32x128xf32>, vector<8x128xf32> -> vector<8x128xf32>
    %279 = arith.addf %277, %278 : vector<8x128xf32>
    %280 = arith.negf %279 : vector<8x128xf32>
    %281 = math.exp %280 : vector<8x128xf32>
    %cst_87 = arith.constant 1.000000e+00 : f32
    %282 = vector.broadcast %cst_87 : f32 to vector<8x128xf32>
    %283 = arith.addf %282, %281 : vector<8x128xf32>
    %284 = arith.divf %282, %283 : vector<8x128xf32>
    %285 = math.tanh %279 : vector<8x128xf32>
    %286 = vector.extract_strided_slice %284 {offsets = [0, 0], sizes = [8, 32], strides = [1, 1]} : vector<8x128xf32> to vector<8x32xf32>
    %287 = vector.extract_strided_slice %284 {offsets = [0, 32], sizes = [8, 32], strides = [1, 1]} : vector<8x128xf32> to vector<8x32xf32>
    %288 = vector.extract_strided_slice %285 {offsets = [0, 64], sizes = [8, 32], strides = [1, 1]} : vector<8x128xf32> to vector<8x32xf32>
    %289 = vector.extract_strided_slice %284 {offsets = [0, 96], sizes = [8, 32], strides = [1, 1]} : vector<8x128xf32> to vector<8x32xf32>
    %290 = arith.mulf %287, %269 : vector<8x32xf32>
    %291 = arith.mulf %286, %288 : vector<8x32xf32>
    %292 = arith.addf %290, %291 : vector<8x32xf32>
    %293 = math.tanh %292 : vector<8x32xf32>
    %294 = arith.mulf %289, %293 : vector<8x32xf32>
    %295 = arith.index_cast %275 : i32 to index
    %c0_88 = arith.constant 0 : index
    %296 = vector.load %arg12[%295, %c0_88] : memref<64x32xf32, #tpu.memory_space<vmem>>, vector<8x32xf32>
    tpu.vector_store %arg12[%295, %c0_88], %294 {strides = array<i32>} : memref<64x32xf32, #tpu.memory_space<vmem>>, vector<8x32xf32>,
    %c4_i32_89 = arith.constant 4 : i32
    %c8_i32_90 = arith.constant 8 : i32
    %297 = arith.muli %c4_i32_89, %c8_i32_90 : i32
    %298 = tpu.assume_multiple %297, 8 : i32
    %299 = arith.index_cast %298 : i32 to index
    %c0_91 = arith.constant 0 : index
    %300 = vector.load %arg11[%299, %c0_91] : memref<64x128xf32, #tpu.memory_space<vmem>>, vector<8x128xf32>
    %cst_92 = arith.constant dense<0.000000e+00> : vector<8x128xf32>
    %301 = tpu.matmul %294, %202, %cst_92 {dimension_numbers = #tpu.dot_dimension_numbers<[1], [0], [0], [1], [0, 0, 1, 1], [], []>} : vector<8x32xf32>, vector<32x128xf32>, vector<8x128xf32> -> vector<8x128xf32>
    %302 = arith.addf %300, %301 : vector<8x128xf32>
    %303 = arith.negf %302 : vector<8x128xf32>
    %304 = math.exp %303 : vector<8x128xf32>
    %cst_93 = arith.constant 1.000000e+00 : f32
    %305 = vector.broadcast %cst_93 : f32 to vector<8x128xf32>
    %306 = arith.addf %305, %304 : vector<8x128xf32>
    %307 = arith.divf %305, %306 : vector<8x128xf32>
    %308 = math.tanh %302 : vector<8x128xf32>
    %309 = vector.extract_strided_slice %307 {offsets = [0, 0], sizes = [8, 32], strides = [1, 1]} : vector<8x128xf32> to vector<8x32xf32>
    %310 = vector.extract_strided_slice %307 {offsets = [0, 32], sizes = [8, 32], strides = [1, 1]} : vector<8x128xf32> to vector<8x32xf32>
    %311 = vector.extract_strided_slice %308 {offsets = [0, 64], sizes = [8, 32], strides = [1, 1]} : vector<8x128xf32> to vector<8x32xf32>
    %312 = vector.extract_strided_slice %307 {offsets = [0, 96], sizes = [8, 32], strides = [1, 1]} : vector<8x128xf32> to vector<8x32xf32>
    %313 = arith.mulf %310, %292 : vector<8x32xf32>
    %314 = arith.mulf %309, %311 : vector<8x32xf32>
    %315 = arith.addf %313, %314 : vector<8x32xf32>
    %316 = math.tanh %315 : vector<8x32xf32>
    %317 = arith.mulf %312, %316 : vector<8x32xf32>
    %318 = arith.index_cast %298 : i32 to index
    %c0_94 = arith.constant 0 : index
    %319 = vector.load %arg12[%318, %c0_94] : memref<64x32xf32, #tpu.memory_space<vmem>>, vector<8x32xf32>
    tpu.vector_store %arg12[%318, %c0_94], %317 {strides = array<i32>} : memref<64x32xf32, #tpu.memory_space<vmem>>, vector<8x32xf32>,
    %c5_i32_95 = arith.constant 5 : i32
    %c8_i32_96 = arith.constant 8 : i32
    %320 = arith.muli %c5_i32_95, %c8_i32_96 : i32
    %321 = tpu.assume_multiple %320, 8 : i32
    %322 = arith.index_cast %321 : i32 to index
    %c0_97 = arith.constant 0 : index
    %323 = vector.load %arg11[%322, %c0_97] : memref<64x128xf32, #tpu.memory_space<vmem>>, vector<8x128xf32>
    %cst_98 = arith.constant dense<0.000000e+00> : vector<8x128xf32>
    %324 = tpu.matmul %317, %202, %cst_98 {dimension_numbers = #tpu.dot_dimension_numbers<[1], [0], [0], [1], [0, 0, 1, 1], [], []>} : vector<8x32xf32>, vector<32x128xf32>, vector<8x128xf32> -> vector<8x128xf32>
    %325 = arith.addf %323, %324 : vector<8x128xf32>
    %326 = arith.negf %325 : vector<8x128xf32>
    %327 = math.exp %326 : vector<8x128xf32>
    %cst_99 = arith.constant 1.000000e+00 : f32
    %328 = vector.broadcast %cst_99 : f32 to vector<8x128xf32>
    %329 = arith.addf %328, %327 : vector<8x128xf32>
    %330 = arith.divf %328, %329 : vector<8x128xf32>
    %331 = math.tanh %325 : vector<8x128xf32>
    %332 = vector.extract_strided_slice %330 {offsets = [0, 0], sizes = [8, 32], strides = [1, 1]} : vector<8x128xf32> to vector<8x32xf32>
    %333 = vector.extract_strided_slice %330 {offsets = [0, 32], sizes = [8, 32], strides = [1, 1]} : vector<8x128xf32> to vector<8x32xf32>
    %334 = vector.extract_strided_slice %331 {offsets = [0, 64], sizes = [8, 32], strides = [1, 1]} : vector<8x128xf32> to vector<8x32xf32>
    %335 = vector.extract_strided_slice %330 {offsets = [0, 96], sizes = [8, 32], strides = [1, 1]} : vector<8x128xf32> to vector<8x32xf32>
    %336 = arith.mulf %333, %315 : vector<8x32xf32>
    %337 = arith.mulf %332, %334 : vector<8x32xf32>
    %338 = arith.addf %336, %337 : vector<8x32xf32>
    %339 = math.tanh %338 : vector<8x32xf32>
    %340 = arith.mulf %335, %339 : vector<8x32xf32>
    %341 = arith.index_cast %321 : i32 to index
    %c0_100 = arith.constant 0 : index
    %342 = vector.load %arg12[%341, %c0_100] : memref<64x32xf32, #tpu.memory_space<vmem>>, vector<8x32xf32>
    tpu.vector_store %arg12[%341, %c0_100], %340 {strides = array<i32>} : memref<64x32xf32, #tpu.memory_space<vmem>>, vector<8x32xf32>,
    %c6_i32_101 = arith.constant 6 : i32
    %c8_i32_102 = arith.constant 8 : i32
    %343 = arith.muli %c6_i32_101, %c8_i32_102 : i32
    %344 = tpu.assume_multiple %343, 8 : i32
    %345 = arith.index_cast %344 : i32 to index
    %c0_103 = arith.constant 0 : index
    %346 = vector.load %arg11[%345, %c0_103] : memref<64x128xf32, #tpu.memory_space<vmem>>, vector<8x128xf32>
    %cst_104 = arith.constant dense<0.000000e+00> : vector<8x128xf32>
    %347 = tpu.matmul %340, %202, %cst_104 {dimension_numbers = #tpu.dot_dimension_numbers<[1], [0], [0], [1], [0, 0, 1, 1], [], []>} : vector<8x32xf32>, vector<32x128xf32>, vector<8x128xf32> -> vector<8x128xf32>
    %348 = arith.addf %346, %347 : vector<8x128xf32>
    %349 = arith.negf %348 : vector<8x128xf32>
    %350 = math.exp %349 : vector<8x128xf32>
    %cst_105 = arith.constant 1.000000e+00 : f32
    %351 = vector.broadcast %cst_105 : f32 to vector<8x128xf32>
    %352 = arith.addf %351, %350 : vector<8x128xf32>
    %353 = arith.divf %351, %352 : vector<8x128xf32>
    %354 = math.tanh %348 : vector<8x128xf32>
    %355 = vector.extract_strided_slice %353 {offsets = [0, 0], sizes = [8, 32], strides = [1, 1]} : vector<8x128xf32> to vector<8x32xf32>
    %356 = vector.extract_strided_slice %353 {offsets = [0, 32], sizes = [8, 32], strides = [1, 1]} : vector<8x128xf32> to vector<8x32xf32>
    %357 = vector.extract_strided_slice %354 {offsets = [0, 64], sizes = [8, 32], strides = [1, 1]} : vector<8x128xf32> to vector<8x32xf32>
    %358 = vector.extract_strided_slice %353 {offsets = [0, 96], sizes = [8, 32], strides = [1, 1]} : vector<8x128xf32> to vector<8x32xf32>
    %359 = arith.mulf %356, %338 : vector<8x32xf32>
    %360 = arith.mulf %355, %357 : vector<8x32xf32>
    %361 = arith.addf %359, %360 : vector<8x32xf32>
    %362 = math.tanh %361 : vector<8x32xf32>
    %363 = arith.mulf %358, %362 : vector<8x32xf32>
    %364 = arith.index_cast %344 : i32 to index
    %c0_106 = arith.constant 0 : index
    %365 = vector.load %arg12[%364, %c0_106] : memref<64x32xf32, #tpu.memory_space<vmem>>, vector<8x32xf32>
    tpu.vector_store %arg12[%364, %c0_106], %363 {strides = array<i32>} : memref<64x32xf32, #tpu.memory_space<vmem>>, vector<8x32xf32>,
    %c7_i32_107 = arith.constant 7 : i32
    %c8_i32_108 = arith.constant 8 : i32
    %366 = arith.muli %c7_i32_107, %c8_i32_108 : i32
    %367 = tpu.assume_multiple %366, 8 : i32
    %368 = arith.index_cast %367 : i32 to index
    %c0_109 = arith.constant 0 : index
    %369 = vector.load %arg11[%368, %c0_109] : memref<64x128xf32, #tpu.memory_space<vmem>>, vector<8x128xf32>
    %cst_110 = arith.constant dense<0.000000e+00> : vector<8x128xf32>
    %370 = tpu.matmul %363, %202, %cst_110 {dimension_numbers = #tpu.dot_dimension_numbers<[1], [0], [0], [1], [0, 0, 1, 1], [], []>} : vector<8x32xf32>, vector<32x128xf32>, vector<8x128xf32> -> vector<8x128xf32>
    %371 = arith.addf %369, %370 : vector<8x128xf32>
    %372 = arith.negf %371 : vector<8x128xf32>
    %373 = math.exp %372 : vector<8x128xf32>
    %cst_111 = arith.constant 1.000000e+00 : f32
    %374 = vector.broadcast %cst_111 : f32 to vector<8x128xf32>
    %375 = arith.addf %374, %373 : vector<8x128xf32>
    %376 = arith.divf %374, %375 : vector<8x128xf32>
    %377 = math.tanh %371 : vector<8x128xf32>
    %378 = vector.extract_strided_slice %376 {offsets = [0, 0], sizes = [8, 32], strides = [1, 1]} : vector<8x128xf32> to vector<8x32xf32>
    %379 = vector.extract_strided_slice %376 {offsets = [0, 32], sizes = [8, 32], strides = [1, 1]} : vector<8x128xf32> to vector<8x32xf32>
    %380 = vector.extract_strided_slice %377 {offsets = [0, 64], sizes = [8, 32], strides = [1, 1]} : vector<8x128xf32> to vector<8x32xf32>
    %381 = vector.extract_strided_slice %376 {offsets = [0, 96], sizes = [8, 32], strides = [1, 1]} : vector<8x128xf32> to vector<8x32xf32>
    %382 = arith.mulf %379, %361 : vector<8x32xf32>
    %383 = arith.mulf %378, %380 : vector<8x32xf32>
    %384 = arith.addf %382, %383 : vector<8x32xf32>
    %385 = math.tanh %384 : vector<8x32xf32>
    %386 = arith.mulf %381, %385 : vector<8x32xf32>
    %387 = arith.index_cast %367 : i32 to index
    %c0_112 = arith.constant 0 : index
    %388 = vector.load %arg12[%387, %c0_112] : memref<64x32xf32, #tpu.memory_space<vmem>>, vector<8x32xf32>
    tpu.vector_store %arg12[%387, %c0_112], %386 {strides = array<i32>} : memref<64x32xf32, #tpu.memory_space<vmem>>, vector<8x32xf32>,
    %c8_i32_113 = arith.constant 8 : i32
    %cst_114 = arith.constant 0.000000e+00 : f32
    %389 = vector.broadcast %cst_114 : f32 to vector<8x128xf32>
    %c0_i32_115 = arith.constant 0 : i32
    %c8_i32_116 = arith.constant 8 : i32
    %390 = arith.muli %c0_i32_115, %c8_i32_116 : i32
    %391 = tpu.assume_multiple %390, 8 : i32
    %392 = arith.index_cast %391 : i32 to index
    %c0_117 = arith.constant 0 : index
    %393 = vector.load %arg12[%392, %c0_117] : memref<64x32xf32, #tpu.memory_space<vmem>>, vector<8x32xf32>
    %394 = arith.index_cast %c0_i32_115 : i32 to index
    %c0_118 = arith.constant 0 : index
    %c0_119 = arith.constant 0 : index
    %395 = vector.load %arg8[%394, %c0_118, %c0_119] : memref<8x32x128xf32, #tpu.memory_space<vmem>>, vector<1x32x128xf32>
    %396 = vector.shape_cast %395 : vector<1x32x128xf32> to vector<32x128xf32>
    %cst_120 = arith.constant dense<0.000000e+00> : vector<8x128xf32>
    %397 = tpu.matmul %393, %396, %cst_120 {dimension_numbers = #tpu.dot_dimension_numbers<[1], [0], [0], [1], [0, 0, 1, 1], [], []>} : vector<8x32xf32>, vector<32x128xf32>, vector<8x128xf32> -> vector<8x128xf32>
    %398 = arith.addf %389, %397 : vector<8x128xf32>
    %c1_i32_121 = arith.constant 1 : i32
    %c8_i32_122 = arith.constant 8 : i32
    %399 = arith.muli %c1_i32_121, %c8_i32_122 : i32
    %400 = tpu.assume_multiple %399, 8 : i32
    %401 = arith.index_cast %400 : i32 to index
    %c0_123 = arith.constant 0 : index
    %402 = vector.load %arg12[%401, %c0_123] : memref<64x32xf32, #tpu.memory_space<vmem>>, vector<8x32xf32>
    %403 = arith.index_cast %c1_i32_121 : i32 to index
    %c0_124 = arith.constant 0 : index
    %c0_125 = arith.constant 0 : index
    %404 = vector.load %arg8[%403, %c0_124, %c0_125] : memref<8x32x128xf32, #tpu.memory_space<vmem>>, vector<1x32x128xf32>
    %405 = vector.shape_cast %404 : vector<1x32x128xf32> to vector<32x128xf32>
    %cst_126 = arith.constant dense<0.000000e+00> : vector<8x128xf32>
    %406 = tpu.matmul %402, %405, %cst_126 {dimension_numbers = #tpu.dot_dimension_numbers<[1], [0], [0], [1], [0, 0, 1, 1], [], []>} : vector<8x32xf32>, vector<32x128xf32>, vector<8x128xf32> -> vector<8x128xf32>
    %407 = arith.addf %398, %406 : vector<8x128xf32>
    %c2_i32_127 = arith.constant 2 : i32
    %c8_i32_128 = arith.constant 8 : i32
    %408 = arith.muli %c2_i32_127, %c8_i32_128 : i32
    %409 = tpu.assume_multiple %408, 8 : i32
    %410 = arith.index_cast %409 : i32 to index
    %c0_129 = arith.constant 0 : index
    %411 = vector.load %arg12[%410, %c0_129] : memref<64x32xf32, #tpu.memory_space<vmem>>, vector<8x32xf32>
    %412 = arith.index_cast %c2_i32_127 : i32 to index
    %c0_130 = arith.constant 0 : index
    %c0_131 = arith.constant 0 : index
    %413 = vector.load %arg8[%412, %c0_130, %c0_131] : memref<8x32x128xf32, #tpu.memory_space<vmem>>, vector<1x32x128xf32>
    %414 = vector.shape_cast %413 : vector<1x32x128xf32> to vector<32x128xf32>
    %cst_132 = arith.constant dense<0.000000e+00> : vector<8x128xf32>
    %415 = tpu.matmul %411, %414, %cst_132 {dimension_numbers = #tpu.dot_dimension_numbers<[1], [0], [0], [1], [0, 0, 1, 1], [], []>} : vector<8x32xf32>, vector<32x128xf32>, vector<8x128xf32> -> vector<8x128xf32>
    %416 = arith.addf %407, %415 : vector<8x128xf32>
    %c3_i32_133 = arith.constant 3 : i32
    %c8_i32_134 = arith.constant 8 : i32
    %417 = arith.muli %c3_i32_133, %c8_i32_134 : i32
    %418 = tpu.assume_multiple %417, 8 : i32
    %419 = arith.index_cast %418 : i32 to index
    %c0_135 = arith.constant 0 : index
    %420 = vector.load %arg12[%419, %c0_135] : memref<64x32xf32, #tpu.memory_space<vmem>>, vector<8x32xf32>
    %421 = arith.index_cast %c3_i32_133 : i32 to index
    %c0_136 = arith.constant 0 : index
    %c0_137 = arith.constant 0 : index
    %422 = vector.load %arg8[%421, %c0_136, %c0_137] : memref<8x32x128xf32, #tpu.memory_space<vmem>>, vector<1x32x128xf32>
    %423 = vector.shape_cast %422 : vector<1x32x128xf32> to vector<32x128xf32>
    %cst_138 = arith.constant dense<0.000000e+00> : vector<8x128xf32>
    %424 = tpu.matmul %420, %423, %cst_138 {dimension_numbers = #tpu.dot_dimension_numbers<[1], [0], [0], [1], [0, 0, 1, 1], [], []>} : vector<8x32xf32>, vector<32x128xf32>, vector<8x128xf32> -> vector<8x128xf32>
    %425 = arith.addf %416, %424 : vector<8x128xf32>
    %c4_i32_139 = arith.constant 4 : i32
    %c8_i32_140 = arith.constant 8 : i32
    %426 = arith.muli %c4_i32_139, %c8_i32_140 : i32
    %427 = tpu.assume_multiple %426, 8 : i32
    %428 = arith.index_cast %427 : i32 to index
    %c0_141 = arith.constant 0 : index
    %429 = vector.load %arg12[%428, %c0_141] : memref<64x32xf32, #tpu.memory_space<vmem>>, vector<8x32xf32>
    %430 = arith.index_cast %c4_i32_139 : i32 to index
    %c0_142 = arith.constant 0 : index
    %c0_143 = arith.constant 0 : index
    %431 = vector.load %arg8[%430, %c0_142, %c0_143] : memref<8x32x128xf32, #tpu.memory_space<vmem>>, vector<1x32x128xf32>
    %432 = vector.shape_cast %431 : vector<1x32x128xf32> to vector<32x128xf32>
    %cst_144 = arith.constant dense<0.000000e+00> : vector<8x128xf32>
    %433 = tpu.matmul %429, %432, %cst_144 {dimension_numbers = #tpu.dot_dimension_numbers<[1], [0], [0], [1], [0, 0, 1, 1], [], []>} : vector<8x32xf32>, vector<32x128xf32>, vector<8x128xf32> -> vector<8x128xf32>
    %434 = arith.addf %425, %433 : vector<8x128xf32>
    %c5_i32_145 = arith.constant 5 : i32
    %c8_i32_146 = arith.constant 8 : i32
    %435 = arith.muli %c5_i32_145, %c8_i32_146 : i32
    %436 = tpu.assume_multiple %435, 8 : i32
    %437 = arith.index_cast %436 : i32 to index
    %c0_147 = arith.constant 0 : index
    %438 = vector.load %arg12[%437, %c0_147] : memref<64x32xf32, #tpu.memory_space<vmem>>, vector<8x32xf32>
    %439 = arith.index_cast %c5_i32_145 : i32 to index
    %c0_148 = arith.constant 0 : index
    %c0_149 = arith.constant 0 : index
    %440 = vector.load %arg8[%439, %c0_148, %c0_149] : memref<8x32x128xf32, #tpu.memory_space<vmem>>, vector<1x32x128xf32>
    %441 = vector.shape_cast %440 : vector<1x32x128xf32> to vector<32x128xf32>
    %cst_150 = arith.constant dense<0.000000e+00> : vector<8x128xf32>
    %442 = tpu.matmul %438, %441, %cst_150 {dimension_numbers = #tpu.dot_dimension_numbers<[1], [0], [0], [1], [0, 0, 1, 1], [], []>} : vector<8x32xf32>, vector<32x128xf32>, vector<8x128xf32> -> vector<8x128xf32>
    %443 = arith.addf %434, %442 : vector<8x128xf32>
    %c6_i32_151 = arith.constant 6 : i32
    %c8_i32_152 = arith.constant 8 : i32
    %444 = arith.muli %c6_i32_151, %c8_i32_152 : i32
    %445 = tpu.assume_multiple %444, 8 : i32
    %446 = arith.index_cast %445 : i32 to index
    %c0_153 = arith.constant 0 : index
    %447 = vector.load %arg12[%446, %c0_153] : memref<64x32xf32, #tpu.memory_space<vmem>>, vector<8x32xf32>
    %448 = arith.index_cast %c6_i32_151 : i32 to index
    %c0_154 = arith.constant 0 : index
    %c0_155 = arith.constant 0 : index
    %449 = vector.load %arg8[%448, %c0_154, %c0_155] : memref<8x32x128xf32, #tpu.memory_space<vmem>>, vector<1x32x128xf32>
    %450 = vector.shape_cast %449 : vector<1x32x128xf32> to vector<32x128xf32>
    %cst_156 = arith.constant dense<0.000000e+00> : vector<8x128xf32>
    %451 = tpu.matmul %447, %450, %cst_156 {dimension_numbers = #tpu.dot_dimension_numbers<[1], [0], [0], [1], [0, 0, 1, 1], [], []>} : vector<8x32xf32>, vector<32x128xf32>, vector<8x128xf32> -> vector<8x128xf32>
    %452 = arith.addf %443, %451 : vector<8x128xf32>
    %c7_i32_157 = arith.constant 7 : i32
    %c8_i32_158 = arith.constant 8 : i32
    %453 = arith.muli %c7_i32_157, %c8_i32_158 : i32
    %454 = tpu.assume_multiple %453, 8 : i32
    %455 = arith.index_cast %454 : i32 to index
    %c0_159 = arith.constant 0 : index
    %456 = vector.load %arg12[%455, %c0_159] : memref<64x32xf32, #tpu.memory_space<vmem>>, vector<8x32xf32>
    %457 = arith.index_cast %c7_i32_157 : i32 to index
    %c0_160 = arith.constant 0 : index
    %c0_161 = arith.constant 0 : index
    %458 = vector.load %arg8[%457, %c0_160, %c0_161] : memref<8x32x128xf32, #tpu.memory_space<vmem>>, vector<1x32x128xf32>
    %459 = vector.shape_cast %458 : vector<1x32x128xf32> to vector<32x128xf32>
    %cst_162 = arith.constant dense<0.000000e+00> : vector<8x128xf32>
    %460 = tpu.matmul %456, %459, %cst_162 {dimension_numbers = #tpu.dot_dimension_numbers<[1], [0], [0], [1], [0, 0, 1, 1], [], []>} : vector<8x32xf32>, vector<32x128xf32>, vector<8x128xf32> -> vector<8x128xf32>
    %461 = arith.addf %452, %460 : vector<8x128xf32>
    %c8_i32_163 = arith.constant 8 : i32
    %c0_164 = arith.constant 0 : index
    %c0_165 = arith.constant 0 : index
    %462 = vector.load %arg9[%c0_164, %c0_165] : memref<1x128xf32, #tpu.memory_space<vmem>>, vector<1x128xf32>
    %463 = vector.broadcast %462 : vector<1x128xf32> to vector<8x128xf32>
    %464 = arith.addf %461, %463 : vector<8x128xf32>
    %c0_166 = arith.constant 0 : index
    %c0_167 = arith.constant 0 : index
    %465 = vector.load %arg10[%c0_166, %c0_167] : memref<8x128xf32, #tpu.memory_space<vmem>>, vector<8x128xf32>
    tpu.vector_store %arg10[%c0_166, %c0_167], %464 {strides = array<i32>} : memref<8x128xf32, #tpu.memory_space<vmem>>, vector<8x128xf32>,
    return
  }
  func.func @transform_0(%arg0: i32) -> (i32, i32, i32) {
    %c0_i32 = arith.constant 0 : i32
    %c0_i32_0 = arith.constant 0 : i32
    %c0_i32_1 = arith.constant 0 : i32
    return %arg0, %c0_i32, %c0_i32_0 : i32, i32, i32
  }
  func.func @transform_1(%arg0: i32) -> (i32, i32) {
    %c0_i32 = arith.constant 0 : i32
    %c0_i32_0 = arith.constant 0 : i32
    %c0_i32_1 = arith.constant 0 : i32
    return %c0_i32, %c0_i32_0 : i32, i32
  }
  func.func @transform_2(%arg0: i32) -> (i32, i32) {
    %c0_i32 = arith.constant 0 : i32
    %c0_i32_0 = arith.constant 0 : i32
    %c0_i32_1 = arith.constant 0 : i32
    return %c0_i32, %c0_i32_0 : i32, i32
  }
  func.func @transform_3(%arg0: i32) -> (i32, i32) {
    %c0_i32 = arith.constant 0 : i32
    %c0_i32_0 = arith.constant 0 : i32
    %c0_i32_1 = arith.constant 0 : i32
    return %c0_i32, %c0_i32_0 : i32, i32
  }
  func.func @transform_4(%arg0: i32) -> (i32, i32) {
    %c0_i32 = arith.constant 0 : i32
    %c0_i32_0 = arith.constant 0 : i32
    %c0_i32_1 = arith.constant 0 : i32
    return %c0_i32, %c0_i32_0 : i32, i32
  }
  func.func @transform_5(%arg0: i32) -> (i32, i32) {
    %c0_i32 = arith.constant 0 : i32
    %c0_i32_0 = arith.constant 0 : i32
    %c0_i32_1 = arith.constant 0 : i32
    return %c0_i32, %c0_i32_0 : i32, i32
  }
  func.func @transform_6(%arg0: i32) -> (i32, i32) {
    %c0_i32 = arith.constant 0 : i32
    %c0_i32_0 = arith.constant 0 : i32
    %c0_i32_1 = arith.constant 0 : i32
    return %c0_i32, %c0_i32_0 : i32, i32
  }
  func.func @transform_7(%arg0: i32) -> (i32, i32, i32) {
    %c0_i32 = arith.constant 0 : i32
    %c0_i32_0 = arith.constant 0 : i32
    %c0_i32_1 = arith.constant 0 : i32
    %c0_i32_2 = arith.constant 0 : i32
    return %c0_i32, %c0_i32_0, %c0_i32_1 : i32, i32, i32
  }
  func.func @transform_8(%arg0: i32) -> (i32, i32) {
    %c0_i32 = arith.constant 0 : i32
    %c0_i32_0 = arith.constant 0 : i32
    %c0_i32_1 = arith.constant 0 : i32
    return %c0_i32, %c0_i32_0 : i32, i32
  }
  func.func @transform_9(%arg0: i32) -> (i32, i32) {
    %c0_i32 = arith.constant 0 : i32
    %c0_i32_0 = arith.constant 0 : i32
    return %arg0, %c0_i32 : i32, i32
  }
}

</mosaic_0001>

<bundles_post_ra>
// kernel: tpu_custom_call.1
= control target key start
LH: loop header
LB: loop body
LE: loop exit
PB: predicated region body
PF: predicated region fallthrough
CT: control target
= control target key end

     0   :  { %14 = vsyncpa [#allocation5], 0  ;;  %s4064_s0 = inlined_call_operand.vmem [shape: f32[1,64,16], index: 0, kind: input, shape index: {}]   ;;  %s4065_s1 = inlined_call_operand.hbm [shape: f32[16,128], index: 1, kind: input, shape index: {}]   ;;  %s4066_s2 = inlined_call_operand.vmem [shape: f32[32,128], index: 2, kind: input, shape index: {}]   ;;  %s4067_s3 = inlined_call_operand.vmem [shape: f32[1,128], index: 3, kind: input, shape index: {}]   ;;  %s4068_s4 = inlined_call_operand.vmem [shape: f32[32,128], index: 4, kind: input, shape index: {}]   ;;  %s4069_s5 = inlined_call_operand.vmem [shape: f32[32,128], index: 5, kind: input, shape index: {}]   ;;  %s4070_s6 = inlined_call_operand.vmem [shape: f32[1,128], index: 6, kind: input, shape index: {}]   ;;  %s4071_s7 = inlined_call_operand.hbm [shape: f32[8,32,128], index: 7, kind: input, shape index: {}]   ;;  %s4072_s8 = inlined_call_operand.vmem [shape: f32[1,128], index: 8, kind: input, shape index: {}]   ;;  %s4073_s9 = inlined_call_operand.hbm [shape: f32[8,128], index: 9, kind: output, shape index: {}]  }
   0x1   :  { %15 = vsyncpa [#allocation8], 0 }
   0x2   :  { %16 = vsyncpa [#allocation6], 0  ;;  %s3569_s30 = smov [#allocation4]   ;;  %s3497_s13 = scalar_lea.hbm %s4065_s1, 256 }
   0x3   :  { %s24_s10 = sshll.u32 %s3569_s30, 4  ;;  %p3498_p0 = scmp.ne.s32.totalorder %s4065_s1, %s3497_s13  ;;  %s25_s10 = int_to_ptr.vmem [resolvable:$true] %s24_s10 }
   0x4   :  { %p3501_p1 = scmp.lt.u32.totalorder %s3497_s13, %s4065_s1 }
   0x6   :  { %p3503_p2 = pnand %p3501_p1, %p3498_p0 }
   0x8   :  { %3506 = shalt.err (!%p3503_p2)
}
   0x9   :  { %s3507_s18 = scalar_lea.vmem %s25_s10, 256  ;;  %p3512_p4 = scmp.lt.s32.totalorder %s25_s10, %s25_s10 }
   0xa   :  { %p3508_p3 = scmp.ne.s32.totalorder %s25_s10, %s3507_s18  ;;  %p3513_p5 = scmp.lt.s32.totalorder %s3507_s18, %s3507_s18 }
   0xc   :  { %p3514_p6 = por %p3513_p5, %p3512_p4 }
   0xe   :  { %p3515_p7 = pnand %p3514_p6, %p3508_p3 }
  0x10   :  { %3518 = shalt.err (!%p3515_p7)
}
  0x11   :  { %s3570_s19 = smov 128   ;;  %s3571_s20 = smov 8  }
  0x12   :  { %30 = dma.hbm_to_vmem [thread:$0]  %s4065_s1, 256, %s25_s10, [#allocation5], %s3570_s19, %s3570_s19, %s3571_s20  }
  0x13   :  { %s3572_s23 = smov [#allocation7]   ;;  %s3519_s27 = scalar_lea.hbm %s4071_s7, 4096 }
  0x14   :  { %s46_s24 = sshll.u32 %s3572_s23, 4  ;;  %p3520_p8 = scmp.ne.s32.totalorder %s4071_s7, %s3519_s27  ;;  %s47_s24 = int_to_ptr.vmem [resolvable:$true] %s46_s24 }
  0x15   :  { %p3523_p9 = scmp.lt.u32.totalorder %s3519_s27, %s4071_s7 }
  0x17   :  { %p3525_p10 = pnand %p3523_p9, %p3520_p8 }
  0x19   :  { %3528 = shalt.err (!%p3525_p10)
}
  0x1a   :  { %s3529_s12 = scalar_lea.vmem %s47_s24, 4096  ;;  %p3534_p12 = scmp.lt.s32.totalorder %s47_s24, %s47_s24 }
  0x1b   :  { %p3530_p11 = scmp.ne.s32.totalorder %s47_s24, %s3529_s12  ;;  %p3535_p13 = scmp.lt.s32.totalorder %s3529_s12, %s3529_s12 }
  0x1d   :  { %p3536_p0 = por %p3535_p13, %p3534_p12 }
  0x1f   :  { %p3537_p1 = pnand %p3536_p0, %p3530_p11 }
  0x21   :  { %3540 = shalt.err (!%p3537_p1)
}
  0x22   :  { %52 = dma.hbm_to_vmem [thread:$0]  %s4071_s7, 4096, %s47_s24, [#allocation8], %s3570_s19, %s3570_s19, %s3571_s20  }
  0x23   :  { %3563 = dma.done.wait [#allocation5], 256  }
  0x24   :  { %3564 = vsyncadd [#allocation5], 4294967040 }
  0x25   :  { %3565 = dma.done.wait [#allocation8], 4096  }
  0x26   :  { %3566 = vsyncadd [#allocation8], 4294963200  ;;  %v3573_v0 = vmov 0.0|0.0   ;;  %vm3574_vm0 = vmmov 0   ;;  %v3575_v1 = vmov 0.0   ;;  %vm78_vm1 = vcmask 130048  }
  0x27   :  { %3207 = vmatprep.subr.bf16.mxu1 %v3573_v0  ;;  %2927 = vmatprep.mubr.msk.f32.mxu1 %vm3574_vm0, %v3575_v1  ;;  %v69_v2 = vld [vmem:[#allocation4] sm:$0xff]  ;;  %v70_v3 = vld [vmem:[#allocation4 + $0x8] sm:$0xff]  ;;  %v218_v9 = vld [vmem:[%s4066_s2 + $0x10] sm:$0xff]  ;;  %s3576_s25 = smov 64   ;;  %vm221_vm2 = vcmask 261120   ;;  %s3578_s30 = smov [#allocation9]  }
  0x28   :  { %v216_v4 = vld [vmem:[%s4066_s2] sm:$0xff]  ;;  %v3203_v5 = vpack.c.bf16 %v70_v3, %v69_v2  ;;  %v217_v6 = vld [vmem:[%s4066_s2 + $0x8] sm:$0xff]  ;;  %v219_v10 = vld [vmem:[%s4066_s2 + $0x18] sm:$0xff]  ;;  %s2694_s11 = sshll.u32 %s3578_s30, 4  ;;  %s2695_s11 = int_to_ptr.vmem [resolvable:$true] %s2694_s11 }
  0x29   :  { %v61_v7 = vld [vmem:[%s4064_s0] sm:$0xff]  ;;  %v3665_v8 = vpack.c.bf16 %v217_v6, %v216_v4  ;;  %v62_v11 = vld [vmem:[%s4064_s0 + $0x8] sm:$0xff]  ;;  %v3678_v12 = vpack.c.bf16 %v219_v10, %v218_v9  ;;  %v63_v48 = vld [vmem:[%s4064_s0 + $0x10] sm:$0xff]  ;;  %s3541_s12 = scalar_lea.vmem %s2695_s11, 128  ;;  %p3546_p3 = scmp.lt.s32.totalorder %s2695_s11, %s2695_s11 }
  0x2a   :  { %2907 = vmatprep.mubr.msk.f32.mxu0 %vm78_vm1, %v61_v7  ;;  %3204 = vmatprep.subr.bf16.mxu0 %v3203_v5  ;;  %v3699_v13 = vld [vmem:[%s4067_s3] ss:$0 sm:$0xff]  ;;  %s3577_s3 = smov 32   ;;  %v64_v49 = vld [vmem:[%s4064_s0 + $0x18] sm:$0xff]  ;;  %v66_v51 = vld [vmem:[%s4064_s0 + $0x28] sm:$0xff]  ;;  %p3542_p2 = scmp.ne.s32.totalorder %s2695_s11, %s3541_s12 }
  0x2b   :  { %3209 = vmatpush3.bf16.msra.mxu1 %v3665_v8  ;;  %3206 = vmatpush3.bf16.msra.mxu0 %v3203_v5  ;;  %v65_v50 = vld [vmem:[%s4064_s0 + $0x20] sm:$0xff]  ;;  %v67_v52 = vld [vmem:[%s4064_s0 + $0x30] sm:$0xff]  ;;  %v68_v53 = vld [vmem:[%s4064_s0 + $0x38] sm:$0xff]  ;;  %p3547_p4 = scmp.lt.s32.totalorder %s3541_s12, %s3541_s12 }
  0x2c   :  { %3210 = vmatprep.subr.bf16.mxu1 %v3573_v0  ;;  %3219 = vmatprep.subr.bf16.mxu0 %v3573_v0 }
  0x2d   :  { %p3548_p5 = por %p3547_p4, %p3546_p3 }
  0x2e   :  { %2908 = vmatmul.mubr.msk.f32.vlgmr.msra.gmra.mrb[0].mxu0 %vm78_vm1, %v62_v11 }
  0x2f   :  { %3212 = vmatpush3.bf16.msra.mxu1 %v3678_v12  ;;  %3221 = vmatpush3.bf16.msra.mxu0 %v3665_v8  ;;  %p3549_p6 = pnand %p3548_p5, %p3542_p2 }
  0x30   :  { %3213 = vmatprep.subr.bf16.mxu1 %v3573_v0  ;;  %3222 = vmatprep.subr.bf16.mxu0 %v3573_v0 }
  0x31   :  { %2910 = vmatprep.mubr.msk.f32.mxu0 %vm78_vm1, %v63_v48 }
  0x32   :  { %2928 = vmatmul.mubr.f32.vlgmr.msra.gmra.mrb[0].mxu1 %v3575_v1  ;;  %2911 = vmatmul.mubr.msk.f32.gmra.mrb[2].mxu0 %vm78_vm1, %v64_v49 }
  0x33   :  { %3215 = vmatpush3.bf16.msra.mxu1 %v3665_v8  ;;  %2938 = vmatprep.mubr.msk.f32.mxu1 %vm3574_vm0, %v3575_v1 }
  0x34   :  { %3216 = vmatprep.subr.bf16.mxu1 %v3573_v0  ;;  %3224 = vmatpush3.bf16.msra.mxu0 %v3678_v12 }
  0x35   :  { %3231 = vmatprep.subr.bf16.mxu0 %v3573_v0  ;;  %2913 = vmatprep.mubr.msk.f32.mxu0 %vm78_vm1, %v65_v50 }
  0x36   :  { %2914 = vmatmul.mubr.msk.f32.gmra.mrb[4].mxu0 %vm78_vm1, %v66_v51 }
  0x37   :  { %3218 = vmatpush3.bf16.msra.mxu1 %v3678_v12  ;;  %2916 = vmatprep.mubr.msk.f32.mxu0 %vm78_vm1, %v67_v52 }
  0x38   :  { %3225 = vmatprep.subr.bf16.mxu1 %v3573_v0 }
  0x3a   :  { %2917 = vmatmul.mubr.msk.f32.gmra.mrb[6].mxu0 %vm78_vm1, %v68_v53 }
  0x3b   :  { %2949 = vmatprep.mubr.msk.f32.mxu0 %vm3574_vm0, %v3575_v1 }
 0x101   :  { %v2909_v14 = vpop.f32.mrb[0].mxu0 }
 0x102   :  { %v169_v15 = vpop.f32.mrb[1].mxu0  ;;  %v175_v34 = vadd.f32 %v2909_v14, %v3699_v13 }
 0x103   :  { %v170_v16 = vadd.f32 %v3699_v13, %v169_v15 }
 0x105   :  { %v291_v17 = vpop.f32.mrb[0].mxu1  ;;  %v2912_v57 = vpop.f32.mrb[2].mxu0 }
 0x106   :  { %v295_v18 = vadd.f32 %v291_v17, %v170_v16  ;;  %v2929_v19 = vpop.f32.mrb[1].mxu1  ;;  %v179_v58 = vpop.f32.mrb[3].mxu0 }
 0x107   :  { %v180_v2 = vadd.f32 %v3699_v13, %v179_v58 }
 0x108   :  { %3369 = vtanh.f32 %v295_v18  ;;  %v2713_v21 = vmul.f32 -1.442695, %v295_v18 }
 0x109   :  { %v3745_v59 = vpop.f32.mrb[4].mxu0 }
 0x10a   :  { %3371 = vpow2.f32 %v2713_v21  ;;  %v3747_v60 = vpop.f32.mrb[5].mxu0 }
 0x10d   :  { %v3749_v61 = vpop.f32.mrb[6].mxu0 }
 0x10e   :  { %v3751_v62 = vpop.f32.mrb[7].mxu0 }
 0x112   :  { %v3370_v20 = vpop.eup %3369 }
 0x113   :  { %305 = vrot.lane.b32.xlu0 %v3370_v20, %s3576_s25 }
 0x114   :  { %v3372_v22 = vpop.eup %3371 }
 0x115   :  { %v299_v23 = vadd.f32 1.0, %v3372_v22 }
 0x117   :  { %3373 = vrcp.f32 %v299_v23  ;;  %v185_v23 = vadd.f32 %v2912_v57, %v3699_v13 }
 0x121   :  { %v3374_v24 = vpop.eup %3373 }
 0x122   :  { %v303_v27 = vmul.f32 0.0, %v3374_v24 }
 0x185   :  { %v306_v25 = vpop.permute.xlu0 %305 }
 0x186   :  { %v308_v26 = vmul.f32 %v3374_v24, %v306_v25 }
 0x188   :  { %310 = vrot.lane.b32.xlu0 %v308_v26, %s3577_s3 }
 0x1fa   :  { %v311_v28 = vpop.permute.xlu0 %310 }
 0x1fb   :  { %v313_v29 = vadd.f32 %v311_v28, %v303_v27 }
 0x1fd   :  { %3375 = vtanh.f32 %v313_v29 }
 0x207   :  { %v3376_v30 = vpop.eup %3375 }
 0x208   :  { %316 = vrot.lane.b32.xlu1 %v3376_v30, %s3576_s25 }
 0x27a   :  { %v317_v31 = vpop.permute.xlu1 %316 }
 0x27b   :  { %v319_v32 = vmul.f32 %v3374_v24, %v317_v31 }
 0x27d   :  { %321 = vrot.lane.b32.xlu1 %v319_v32, %s3577_s3 }
 0x2ef   :  { %v322_v33 = vpop.permute.xlu1 %321 }
 0x2f0   :  { %324 = vst.msk [vmem:[#allocation3] sm:$0xff] %vm221_vm2, %v322_v33  ;;  %2939 = vmatmul.mubr.msk.f32.vlgmr.msra.gmra.mrb[2].mxu1 %vm221_vm2, %v322_v33 }
 0x2f1   :  { %3227 = vmatpush3.bf16.msra.mxu1 %v3665_v8  ;;  %2960 = vmatprep.mubr.msk.f32.mxu1 %vm3574_vm0, %v3575_v1 }
 0x2f2   :  { %3228 = vmatprep.subr.bf16.mxu1 %v3573_v0 }
 0x2f5   :  { %3230 = vmatpush3.bf16.msra.mxu1 %v3678_v12 }
 0x2f6   :  { %3237 = vmatprep.subr.bf16.mxu1 %v3573_v0 }
 0x3c3   :  { %v395_v35 = vpop.f32.mrb[2].mxu1 }
 0x3c4   :  { %v399_v36 = vadd.f32 %v395_v35, %v175_v34  ;;  %v2940_v37 = vpop.f32.mrb[3].mxu1 }
 0x3c6   :  { %3377 = vtanh.f32 %v399_v36  ;;  %v2715_v39 = vmul.f32 -1.442695, %v399_v36 }
 0x3c8   :  { %3379 = vpow2.f32 %v2715_v39 }
 0x3d0   :  { %v3378_v38 = vpop.eup %3377 }
 0x3d1   :  { %409 = vrot.lane.b32.xlu0 %v3378_v38, %s3576_s25 }
 0x3d2   :  { %v3380_v40 = vpop.eup %3379 }
 0x3d3   :  { %v403_v41 = vadd.f32 1.0, %v3380_v40 }
 0x3d5   :  { %3381 = vrcp.f32 %v403_v41  ;;  %v190_v41 = vadd.f32 %v3699_v13, %v3747_v60  ;;  %v195_v60 = vadd.f32 %v3745_v59, %v3699_v13 }
 0x3df   :  { %v3382_v42 = vpop.eup %3381 }
 0x3e0   :  { %v407_v45 = vmul.f32 %v3382_v42, %v313_v29 }
 0x443   :  { %v410_v43 = vpop.permute.xlu0 %409 }
 0x444   :  { %v412_v44 = vmul.f32 %v3382_v42, %v410_v43 }
 0x446   :  { %414 = vrot.lane.b32.xlu1 %v412_v44, %s3577_s3 }
 0x4b8   :  { %v415_v46 = vpop.permute.xlu1 %414 }
 0x4b9   :  { %v417_v47 = vadd.f32 %v415_v46, %v407_v45 }
 0x4bb   :  { %3383 = vtanh.f32 %v417_v47 }
 0x4c5   :  { %v3384_v54 = vpop.eup %3383 }
 0x4c6   :  { %420 = vrot.lane.b32.xlu0 %v3384_v54, %s3576_s25 }
 0x538   :  { %v421_v55 = vpop.permute.xlu0 %420 }
 0x539   :  { %v423_v56 = vmul.f32 %v3382_v42, %v421_v55 }
 0x53b   :  { %425 = vrot.lane.b32.xlu1 %v423_v56, %s3577_s3 }
 0x5ad   :  { %v426_v63 = vpop.permute.xlu1 %425 }
 0x5ae   :  { %429 = vst.msk [vmem:[#allocation3 + $0x8] sm:$0xff] %vm221_vm2, %v426_v63  ;;  %2950 = vmatmul.mubr.msk.f32.vlgmr.msra.gmra.mrb[8].mxu0 %vm221_vm2, %v426_v63 }
 0x5af   :  { %3233 = vmatpush3.bf16.msra.mxu0 %v3665_v8  ;;  %2971 = vmatprep.mubr.msk.f32.mxu0 %vm3574_vm0, %v3575_v1 }
 0x5b0   :  { %3234 = vmatprep.subr.bf16.mxu0 %v3573_v0 }
 0x5b3   :  { %3236 = vmatpush3.bf16.msra.mxu0 %v3678_v12 }
 0x5b4   :  { %3243 = vmatprep.subr.bf16.mxu0 %v3573_v0 }
 0x681   :  { %v500_v3 = vpop.f32.mrb[8].mxu0 }
 0x682   :  { %v504_v4 = vadd.f32 %v500_v3, %v180_v2  ;;  %v2951_v5 = vpop.f32.mrb[9].mxu0 }
 0x684   :  { %3385 = vtanh.f32 %v504_v4  ;;  %v2717_v7 = vmul.f32 -1.442695, %v504_v4 }
 0x686   :  { %3387 = vpow2.f32 %v2717_v7 }
 0x68e   :  { %v3386_v6 = vpop.eup %3385 }
 0x68f   :  { %514 = vrot.lane.b32.xlu0 %v3386_v6, %s3576_s25 }
 0x690   :  { %v3388_v9 = vpop.eup %3387 }
 0x691   :  { %v508_v10 = vadd.f32 1.0, %v3388_v9 }
 0x693   :  { %3389 = vrcp.f32 %v508_v10 }
 0x69d   :  { %v3390_v11 = vpop.eup %3389 }
 0x69e   :  { %v512_v16 = vmul.f32 %v3390_v11, %v417_v47 }
 0x701   :  { %v515_v14 = vpop.permute.xlu0 %514 }
 0x702   :  { %v517_v15 = vmul.f32 %v3390_v11, %v515_v14  ;;  %v1068_v14 = vld [vmem:[%s4068_s4] sm:$0xff] }
 0x704   :  { %519 = vrot.lane.b32.xlu1 %v517_v15, %s3577_s3  ;;  %v1069_v15 = vld [vmem:[%s4068_s4 + $0x8] sm:$0xff] }
 0x776   :  { %v520_v17 = vpop.permute.xlu1 %519 }
 0x777   :  { %v522_v18 = vadd.f32 %v520_v17, %v512_v16  ;;  %v3255_v16 = vpack.c.bf16 %v1069_v15, %v1068_v14 }
 0x779   :  { %3391 = vtanh.f32 %v522_v18 }
 0x783   :  { %v3392_v19 = vpop.eup %3391 }
 0x784   :  { %525 = vrot.lane.b32.xlu0 %v3392_v19, %s3576_s25 }
 0x7f6   :  { %v526_v20 = vpop.permute.xlu0 %525 }
 0x7f7   :  { %v528_v21 = vmul.f32 %v3390_v11, %v526_v20  ;;  %v1070_v20 = vld [vmem:[%s4068_s4 + $0x10] sm:$0xff] }
 0x7f9   :  { %530 = vrot.lane.b32.xlu1 %v528_v21, %s3577_s3  ;;  %v1071_v21 = vld [vmem:[%s4068_s4 + $0x18] sm:$0xff] }
 0x86b   :  { %v531_v22 = vpop.permute.xlu1 %530 }
 0x86c   :  { %534 = vst.msk [vmem:[#allocation3 + $0x10] sm:$0xff] %vm221_vm2, %v531_v22  ;;  %2961 = vmatmul.mubr.msk.f32.vlgmr.msra.gmra.mrb[4].mxu1 %vm221_vm2, %v531_v22  ;;  %v3259_v22 = vpack.c.bf16 %v1071_v21, %v1070_v20 }
 0x86d   :  { %3239 = vmatpush3.bf16.msra.mxu1 %v3665_v8  ;;  %2982 = vmatprep.mubr.msk.f32.mxu1 %vm3574_vm0, %v3575_v1 }
 0x86e   :  { %3240 = vmatprep.subr.bf16.mxu1 %v3573_v0 }
 0x871   :  { %3242 = vmatpush3.bf16.msra.mxu1 %v3678_v12 }
 0x872   :  { %3249 = vmatprep.subr.bf16.mxu1 %v3573_v0 }
 0x93f   :  { %v605_v24 = vpop.f32.mrb[4].mxu1 }
 0x940   :  { %v609_v25 = vadd.f32 %v605_v24, %v185_v23  ;;  %v2962_v26 = vpop.f32.mrb[5].mxu1  ;;  %v1060_v24 = vld [vmem:[#allocation3] sm:$0xff] }
 0x941   :  { %v1062_v26 = vld [vmem:[#allocation3 + $0x10] sm:$0xff] }
 0x942   :  { %3393 = vtanh.f32 %v609_v25  ;;  %v2719_v28 = vmul.f32 -1.442695, %v609_v25  ;;  %v1061_v25 = vld [vmem:[#allocation3 + $0x8] sm:$0xff] }
 0x944   :  { %3395 = vpow2.f32 %v2719_v28 }
 0x94c   :  { %v3394_v27 = vpop.eup %3393 }
 0x94d   :  { %619 = vrot.lane.b32.xlu0 %v3394_v27, %s3576_s25 }
 0x94e   :  { %v3396_v29 = vpop.eup %3395 }
 0x94f   :  { %v613_v30 = vadd.f32 1.0, %v3396_v29 }
 0x951   :  { %3397 = vrcp.f32 %v613_v30  ;;  %v200_v30 = vadd.f32 %v3699_v13, %v3751_v62 }
 0x95b   :  { %v3398_v31 = vpop.eup %3397 }
 0x95c   :  { %v617_v34 = vmul.f32 %v3398_v31, %v522_v18 }
 0x9bf   :  { %v620_v32 = vpop.permute.xlu0 %619 }
 0x9c0   :  { %v622_v33 = vmul.f32 %v3398_v31, %v620_v32 }
 0x9c2   :  { %624 = vrot.lane.b32.xlu1 %v622_v33, %s3577_s3 }
 0xa34   :  { %v625_v35 = vpop.permute.xlu1 %624 }
 0xa35   :  { %v627_v36 = vadd.f32 %v625_v35, %v617_v34 }
 0xa37   :  { %3399 = vtanh.f32 %v627_v36 }
 0xa41   :  { %v3400_v37 = vpop.eup %3399 }
 0xa42   :  { %630 = vrot.lane.b32.xlu0 %v3400_v37, %s3576_s25 }
 0xab4   :  { %v631_v38 = vpop.permute.xlu0 %630 }
 0xab5   :  { %v633_v39 = vmul.f32 %v3398_v31, %v631_v38 }
 0xab7   :  { %635 = vrot.lane.b32.xlu1 %v633_v39, %s3577_s3 }
 0xb29   :  { %v636_v40 = vpop.permute.xlu1 %635 }
 0xb2a   :  { %639 = vst.msk [vmem:[#allocation3 + $0x18] sm:$0xff] %vm221_vm2, %v636_v40  ;;  %2972 = vmatmul.mubr.msk.f32.vlgmr.msra.gmra.mrb[10].mxu0 %vm221_vm2, %v636_v40 }
 0xb2b   :  { %3245 = vmatpush3.bf16.msra.mxu0 %v3665_v8  ;;  %2993 = vmatprep.mubr.msk.f32.mxu0 %vm3574_vm0, %v3575_v1 }
 0xb2c   :  { %3246 = vmatprep.subr.bf16.mxu0 %v3573_v0 }
 0xb2f   :  { %3248 = vmatpush3.bf16.msra.mxu0 %v3678_v12 }
 0xb30   :  { %3256 = vmatprep.subr.bf16.mxu0 %v3255_v16 }
 0xb31   :  { %v1063_v27 = vld [vmem:[#allocation3 + $0x18] sm:$0xff] }
 0xbfd   :  { %v710_v42 = vpop.f32.mrb[10].mxu0 }
 0xbfe   :  { %v714_v43 = vadd.f32 %v710_v42, %v190_v41  ;;  %v2973_v44 = vpop.f32.mrb[11].mxu0 }
 0xc00   :  { %3401 = vtanh.f32 %v714_v43  ;;  %v2721_v46 = vmul.f32 -1.442695, %v714_v43 }
 0xc02   :  { %3403 = vpow2.f32 %v2721_v46 }
 0xc0a   :  { %v3402_v45 = vpop.eup %3401 }
 0xc0b   :  { %724 = vrot.lane.b32.xlu0 %v3402_v45, %s3576_s25 }
 0xc0c   :  { %v3404_v47 = vpop.eup %3403 }
 0xc0d   :  { %v718_v48 = vadd.f32 1.0, %v3404_v47 }
 0xc0f   :  { %3405 = vrcp.f32 %v718_v48 }
 0xc19   :  { %v3406_v49 = vpop.eup %3405 }
 0xc1a   :  { %v722_v52 = vmul.f32 %v3406_v49, %v627_v36 }
 0xc7d   :  { %v725_v50 = vpop.permute.xlu0 %724 }
 0xc7e   :  { %v727_v51 = vmul.f32 %v3406_v49, %v725_v50  ;;  %v1216_v50 = vld [vmem:[%s4069_s5] sm:$0xff] }
 0xc80   :  { %729 = vrot.lane.b32.xlu1 %v727_v51, %s3577_s3  ;;  %v1217_v51 = vld [vmem:[%s4069_s5 + $0x8] sm:$0xff] }
 0xcf2   :  { %v730_v53 = vpop.permute.xlu1 %729 }
 0xcf3   :  { %v732_v54 = vadd.f32 %v730_v53, %v722_v52  ;;  %v3851_v52 = vpack.c.bf16 %v1217_v51, %v1216_v50  ;;  %v1218_v53 = vld [vmem:[%s4069_s5 + $0x10] sm:$0xff] }
 0xcf5   :  { %3407 = vtanh.f32 %v732_v54 }
 0xcff   :  { %v3408_v55 = vpop.eup %3407 }
 0xd00   :  { %735 = vrot.lane.b32.xlu0 %v3408_v55, %s3576_s25 }
 0xd72   :  { %v736_v56 = vpop.permute.xlu0 %735 }
 0xd73   :  { %v738_v57 = vmul.f32 %v3406_v49, %v736_v56 }
 0xd75   :  { %740 = vrot.lane.b32.xlu1 %v738_v57, %s3577_s3 }
 0xde7   :  { %v741_v58 = vpop.permute.xlu1 %740 }
 0xde8   :  { %744 = vst.msk [vmem:[#allocation3 + $0x20] sm:$0xff] %vm221_vm2, %v741_v58  ;;  %2983 = vmatmul.mubr.msk.f32.vlgmr.msra.gmra.mrb[6].mxu1 %vm221_vm2, %v741_v58 }
 0xde9   :  { %3251 = vmatpush3.bf16.msra.mxu1 %v3665_v8  ;;  %3004 = vmatprep.mubr.msk.f32.mxu1 %vm3574_vm0, %v3575_v1 }
 0xdea   :  { %3252 = vmatprep.subr.bf16.mxu1 %v3573_v0 }
 0xded   :  { %3254 = vmatpush3.bf16.msra.mxu1 %v3678_v12 }
 0xdee   :  { %3263 = vmatprep.subr.bf16.mxu1 %v3573_v0 }
 0xdef   :  { %v1064_v28 = vld [vmem:[#allocation3 + $0x20] sm:$0xff] }
 0xebb   :  { %v815_v63 = vpop.f32.mrb[6].mxu1 }
 0xebc   :  { %v819_v2 = vadd.f32 %v815_v63, %v195_v60  ;;  %v2984_v3 = vpop.f32.mrb[7].mxu1  ;;  %v205_v63 = vadd.f32 %v3749_v61, %v3699_v13 }
 0xebe   :  { %3409 = vtanh.f32 %v819_v2  ;;  %v2723_v8 = vmul.f32 -1.442695, %v819_v2 }
 0xec0   :  { %3411 = vpow2.f32 %v2723_v8  ;;  %v3887_v8 = vld [vmem:[%s4070_s6] ss:$0 sm:$0xff] }
 0xec8   :  { %v3410_v4 = vpop.eup %3409 }
 0xec9   :  { %829 = vrot.lane.b32.xlu0 %v3410_v4, %s3576_s25 }
 0xeca   :  { %v3412_v5 = vpop.eup %3411 }
 0xecb   :  { %v823_v6 = vadd.f32 1.0, %v3412_v5 }
 0xecd   :  { %3413 = vrcp.f32 %v823_v6 }
 0xed7   :  { %v3414_v7 = vpop.eup %3413 }
 0xed8   :  { %v827_v10 = vmul.f32 %v3414_v7, %v732_v54  ;;  %v1219_v54 = vld [vmem:[%s4069_s5 + $0x18] sm:$0xff] }
 0xed9   :  { %v3861_v55 = vpack.c.bf16 %v1219_v54, %v1218_v53 }
 0xf3b   :  { %v830_v9 = vpop.permute.xlu0 %829 }
 0xf3c   :  { %v832_v12 = vmul.f32 %v3414_v7, %v830_v9 }
 0xf3e   :  { %834 = vrot.lane.b32.xlu1 %v832_v12, %s3577_s3 }
 0xfb0   :  { %v835_v11 = vpop.permute.xlu1 %834 }
 0xfb1   :  { %v837_v59 = vadd.f32 %v835_v11, %v827_v10 }
 0xfb3   :  { %3415 = vtanh.f32 %v837_v59 }
 0xfbd   :  { %v3416_v17 = vpop.eup %3415 }
 0xfbe   :  { %840 = vrot.lane.b32.xlu0 %v3416_v17, %s3576_s25 }
0x1030   :  { %v841_v18 = vpop.permute.xlu0 %840 }
0x1031   :  { %v843_v19 = vmul.f32 %v3414_v7, %v841_v18 }
0x1033   :  { %845 = vrot.lane.b32.xlu1 %v843_v19, %s3577_s3 }
0x10a5   :  { %v846_v23 = vpop.permute.xlu1 %845 }
0x10a6   :  { %849 = vst.msk [vmem:[#allocation3 + $0x28] sm:$0xff] %vm221_vm2, %v846_v23  ;;  %2994 = vmatmul.mubr.msk.f32.vlgmr.msra.gmra.mrb[12].mxu0 %vm221_vm2, %v846_v23 }
0x10a7   :  { %3258 = vmatpush3.bf16.msra.mxu0 %v3255_v16  ;;  %3015 = vmatprep.mubr.msk.f32.mxu0 %vm221_vm2, %v1060_v24 }
0x10a8   :  { %3260 = vmatprep.subr.bf16.mxu0 %v3259_v22 }
0x10ab   :  { %3262 = vmatpush3.bf16.msra.mxu0 %v3259_v22 }
0x10ac   :  { %3275 = vmatprep.subr.bf16.mxu0 %v3573_v0 }
0x10ad   :  { %v1065_v29 = vld [vmem:[#allocation3 + $0x28] sm:$0xff] }
0x10ae   :  { %3016 = vmatmul.mubr.msk.f32.vlgmr.msra.gmra.mrb[14].mxu0 %vm221_vm2, %v1061_v25 }
0x10af   :  { %3018 = vmatprep.mubr.msk.f32.mxu0 %vm221_vm2, %v1062_v26  ;;  %3277 = vmatpush3.bf16.msra.mxu0 %v3851_v52 }
0x10b0   :  { %3278 = vmatprep.subr.bf16.mxu0 %v3573_v0 }
0x10b2   :  { %3019 = vmatmul.mubr.msk.f32.gmra.mrb[16].mxu0 %vm221_vm2, %v1063_v27 }
0x10b3   :  { %3021 = vmatprep.mubr.msk.f32.mxu0 %vm221_vm2, %v1064_v28  ;;  %3280 = vmatpush3.bf16.msra.mxu0 %v3861_v55 }
0x10b4   :  { %3287 = vmatprep.subr.bf16.mxu0 %v3573_v0 }
0x10b6   :  { %3022 = vmatmul.mubr.msk.f32.gmra.mrb[18].mxu0 %vm221_vm2, %v1065_v29 }
0x1179   :  { %v920_v31 = vpop.f32.mrb[12].mxu0 }
0x117a   :  { %v924_v32 = vadd.f32 %v920_v31, %v200_v30  ;;  %v2995_v33 = vpop.f32.mrb[13].mxu0 }
0x117c   :  { %3417 = vtanh.f32 %v924_v32  ;;  %v2725_v41 = vmul.f32 -1.442695, %v924_v32 }
0x117e   :  { %3419 = vpow2.f32 %v2725_v41 }
0x1181   :  { %v3829_v34 = vpop.f32.mrb[14].mxu0 }
0x1182   :  { %v1169_v35 = vpop.f32.mrb[15].mxu0 }
0x1183   :  { %v1170_v5 = vadd.f32 %v3887_v8, %v1169_v35 }
0x1185   :  { %v3831_v36 = vpop.f32.mrb[16].mxu0 }
0x1186   :  { %v3418_v37 = vpop.eup %3417  ;;  %v3833_v38 = vpop.f32.mrb[17].mxu0 }
0x1187   :  { %934 = vrot.lane.b32.xlu0 %v3418_v37, %s3576_s25  ;;  %v1175_v37 = vadd.f32 %v3829_v34, %v3887_v8 }
0x1188   :  { %v3420_v62 = vpop.eup %3419 }
0x1189   :  { %v3836_v39 = vpop.f32.mrb[18].mxu0  ;;  %v928_v42 = vadd.f32 1.0, %v3420_v62 }
0x118a   :  { %v3838_v40 = vpop.f32.mrb[19].mxu0 }
0x118b   :  { %3421 = vrcp.f32 %v928_v42 }
0x1195   :  { %v3422_v43 = vpop.eup %3421 }
0x1196   :  { %v932_v46 = vmul.f32 %v3422_v43, %v837_v59 }
0x11f9   :  { %v935_v44 = vpop.permute.xlu0 %934 }
0x11fa   :  { %v937_v45 = vmul.f32 %v3422_v43, %v935_v44 }
0x11fc   :  { %939 = vrot.lane.b32.xlu1 %v937_v45, %s3577_s3 }
0x126e   :  { %v940_v47 = vpop.permute.xlu1 %939 }
0x126f   :  { %v3841_v48 = vadd.f32 %v940_v47, %v932_v46 }
0x1271   :  { %3423 = vtanh.f32 %v3841_v48 }
0x127b   :  { %v3424_v49 = vpop.eup %3423 }
0x127c   :  { %945 = vrot.lane.b32.xlu0 %v3424_v49, %s3576_s25 }
0x12ee   :  { %v946_v56 = vpop.permute.xlu0 %945 }
0x12ef   :  { %v948_v57 = vmul.f32 %v3422_v43, %v946_v56 }
0x12f1   :  { %950 = vrot.lane.b32.xlu1 %v948_v57, %s3577_s3 }
0x1363   :  { %v951_v58 = vpop.permute.xlu1 %950 }
0x1364   :  { %954 = vst.msk [vmem:[#allocation3 + $0x30] sm:$0xff] %vm221_vm2, %v951_v58  ;;  %3005 = vmatmul.mubr.msk.f32.vlgmr.msra.gmra.mrb[8].mxu1 %vm221_vm2, %v951_v58 }
0x1365   :  { %3265 = vmatpush3.bf16.msra.mxu1 %v3851_v52  ;;  %3035 = vmatprep.mubr.msk.f32.mxu1 %vm3574_vm0, %v3575_v1 }
0x1366   :  { %3266 = vmatprep.subr.bf16.mxu1 %v3573_v0 }
0x1369   :  { %3268 = vmatpush3.bf16.msra.mxu1 %v3861_v55 }
0x136a   :  { %3269 = vmatprep.subr.bf16.mxu1 %v3573_v0 }
0x136b   :  { %v1066_v60 = vld [vmem:[#allocation3 + $0x30] sm:$0xff] }
0x136c   :  { %3036 = vmatmul.mubr.f32.vlgmr.msra.gmra.mrb[10].mxu1 %v3575_v1  ;;  %3024 = vmatprep.mubr.msk.f32.mxu0 %vm221_vm2, %v1066_v60 }
0x136d   :  { %3271 = vmatpush3.bf16.msra.mxu1 %v3851_v52  ;;  %3046 = vmatprep.mubr.msk.f32.mxu1 %vm3574_vm0, %v3575_v1 }
0x136e   :  { %3272 = vmatprep.subr.bf16.mxu1 %v3573_v0 }
0x1371   :  { %3274 = vmatpush3.bf16.msra.mxu1 %v3861_v55 }
0x1372   :  { %3281 = vmatprep.subr.bf16.mxu1 %v3573_v0 }
0x1437   :  { %v1025_v2 = vpop.f32.mrb[8].mxu1 }
0x1438   :  { %v1029_v3 = vadd.f32 %v1025_v2, %v205_v63  ;;  %v3006_v4 = vpop.f32.mrb[9].mxu1 }
0x143a   :  { %v2727_v20 = vmul.f32 -1.442695, %v1029_v3 }
0x143f   :  { %v1287_v6 = vpop.f32.mrb[10].mxu1 }
0x1440   :  { %v1291_v7 = vadd.f32 %v1287_v6, %v1170_v5  ;;  %v3037_v9 = vpop.f32.mrb[11].mxu1 }
0x1442   :  { %3425 = vtanh.f32 %v1291_v7  ;;  %v2737_v10 = vmul.f32 -1.442695, %v1291_v7 }
0x1444   :  { %3427 = vpow2.f32 %v2737_v10 }
0x144c   :  { %v3426_v12 = vpop.eup %3425 }
0x144d   :  { %1301 = vrot.lane.b32.xlu0 %v3426_v12, %s3576_s25 }
0x144e   :  { %v3428_v13 = vpop.eup %3427 }
0x144f   :  { %v1295_v61 = vadd.f32 1.0, %v3428_v13 }
0x1451   :  { %3429 = vrcp.f32 %v1295_v61 }
0x145b   :  { %v3430_v11 = vpop.eup %3429 }
0x145c   :  { %v1299_v15 = vmul.f32 0.0, %v3430_v11 }
0x14bf   :  { %v1302_v59 = vpop.permute.xlu0 %1301 }
0x14c0   :  { %v1304_v14 = vmul.f32 %v3430_v11, %v1302_v59 }
0x14c2   :  { %1306 = vrot.lane.b32.xlu1 %v1304_v14, %s3577_s3 }
0x1534   :  { %v1307_v16 = vpop.permute.xlu1 %1306 }
0x1535   :  { %v1309_v17 = vadd.f32 %v1307_v16, %v1299_v15 }
0x1537   :  { %3431 = vtanh.f32 %v1309_v17 }
0x1538   :  { %3433 = vtanh.f32 %v1029_v3  ;;  %v1180_v3 = vadd.f32 %v3887_v8, %v3833_v38 }
0x1539   :  { %3435 = vpow2.f32 %v2727_v20 }
0x1541   :  { %v3432_v18 = vpop.eup %3431 }
0x1542   :  { %1312 = vrot.lane.b32.xlu0 %v3432_v18, %s3576_s25  ;;  %v3434_v19 = vpop.eup %3433 }
0x1543   :  { %v3436_v21 = vpop.eup %3435 }
0x1544   :  { %v1033_v22 = vadd.f32 1.0, %v3436_v21 }
0x1546   :  { %1039 = vrot.lane.b32.xlu0 %v3434_v19, %s3576_s25  ;;  %3437 = vrcp.f32 %v1033_v22  ;;  %v1185_v19 = vadd.f32 %v3831_v36, %v3887_v8 }
0x1550   :  { %v3438_v25 = vpop.eup %3437 }
0x1551   :  { %v1037_v29 = vmul.f32 %v3438_v25, %v3841_v48 }
0x15b4   :  { %v1313_v23 = vpop.permute.xlu0 %1312 }
0x15b5   :  { %v1315_v24 = vmul.f32 %v3430_v11, %v1313_v23 }
0x15b7   :  { %1317 = vrot.lane.b32.xlu1 %v1315_v24, %s3577_s3 }
0x15b8   :  { %v1040_v26 = vpop.permute.xlu0 %1039 }
0x15b9   :  { %v1042_v27 = vmul.f32 %v3438_v25, %v1040_v26 }
0x15bb   :  { %1044 = vrot.lane.b32.xlu0 %v1042_v27, %s3577_s3 }
0x1629   :  { %v1318_v28 = vpop.permute.xlu1 %1317 }
0x162a   :  { %1320 = vst.msk [vmem:[#allocation3] sm:$0xff] %vm221_vm2, %v1318_v28  ;;  %3047 = vmatmul.mubr.msk.f32.vlgmr.msra.gmra.mrb[12].mxu1 %vm221_vm2, %v1318_v28 }
0x162b   :  { %3283 = vmatpush3.bf16.msra.mxu1 %v3851_v52  ;;  %3068 = vmatprep.mubr.msk.f32.mxu1 %vm3574_vm0, %v3575_v1 }
0x162c   :  { %3284 = vmatprep.subr.bf16.mxu1 %v3573_v0 }
0x162d   :  { %v1045_v30 = vpop.permute.xlu0 %1044 }
0x162e   :  { %v1047_v31 = vadd.f32 %v1045_v30, %v1037_v29 }
0x162f   :  { %3286 = vmatpush3.bf16.msra.mxu1 %v3861_v55 }
0x1630   :  { %3439 = vtanh.f32 %v1047_v31  ;;  %3293 = vmatprep.subr.bf16.mxu1 %v3573_v0 }
0x163a   :  { %v3440_v32 = vpop.eup %3439 }
0x163b   :  { %1050 = vrot.lane.b32.xlu0 %v3440_v32, %s3576_s25 }
0x16ad   :  { %v1051_v33 = vpop.permute.xlu0 %1050 }
0x16ae   :  { %v1053_v35 = vmul.f32 %v3438_v25, %v1051_v33 }
0x16b0   :  { %1055 = vrot.lane.b32.xlu0 %v1053_v35, %s3577_s3 }
0x16fd   :  { %v1390_v41 = vpop.f32.mrb[12].mxu1 }
0x16fe   :  { %v1394_v62 = vadd.f32 %v1390_v41, %v1175_v37  ;;  %v3048_v42 = vpop.f32.mrb[13].mxu1  ;;  %v1190_v41 = vadd.f32 %v3887_v8, %v3838_v40 }
0x1700   :  { %3441 = vtanh.f32 %v1394_v62  ;;  %v2739_v46 = vmul.f32 -1.442695, %v1394_v62 }
0x1702   :  { %3443 = vpow2.f32 %v2739_v46 }
0x170a   :  { %v3442_v43 = vpop.eup %3441 }
0x170b   :  { %1404 = vrot.lane.b32.xlu1 %v3442_v43, %s3576_s25 }
0x170c   :  { %v3444_v47 = vpop.eup %3443 }
0x170d   :  { %v1398_v34 = vadd.f32 1.0, %v3444_v47 }
0x170f   :  { %3445 = vrcp.f32 %v1398_v34 }
0x1719   :  { %v3446_v48 = vpop.eup %3445 }
0x171a   :  { %v1402_v51 = vmul.f32 %v3446_v48, %v1309_v17 }
0x1722   :  { %v1056_v44 = vpop.permute.xlu0 %1055 }
0x1723   :  { %1059 = vst.msk [vmem:[#allocation3 + $0x38] sm:$0xff] %vm221_vm2, %v1056_v44 }
0x172a   :  { %v1067_v45 = vld [vmem:[#allocation3 + $0x38] sm:$0xff] }
0x172b   :  { %3025 = vmatmul.mubr.msk.f32.gmra.mrb[20].mxu0 %vm221_vm2, %v1067_v45 }
0x172c   :  { %3057 = vmatprep.mubr.msk.f32.mxu0 %vm3574_vm0, %v3575_v1 }
0x177d   :  { %v1405_v49 = vpop.permute.xlu1 %1404 }
0x177e   :  { %v1407_v50 = vmul.f32 %v3446_v48, %v1405_v49 }
0x1780   :  { %1409 = vrot.lane.b32.xlu1 %v1407_v50, %s3577_s3 }
0x17f2   :  { %v1410_v53 = vpop.permute.xlu1 %1409 }
0x17f3   :  { %v1412_v54 = vadd.f32 %v1410_v53, %v1402_v51 }
0x17f5   :  { %3447 = vtanh.f32 %v1412_v54 }
0x17fe   :  { %v3915_v56 = vpop.f32.mrb[20].mxu0 }
0x17ff   :  { %v3448_v57 = vpop.eup %3447  ;;  %v3917_v58 = vpop.f32.mrb[21].mxu0 }
0x1800   :  { %1415 = vrot.lane.b32.xlu1 %v3448_v57, %s3576_s25 }
0x1872   :  { %v1416_v60 = vpop.permute.xlu1 %1415 }
0x1873   :  { %v1418_v63 = vmul.f32 %v3446_v48, %v1416_v60 }
0x1875   :  { %1420 = vrot.lane.b32.xlu1 %v1418_v63, %s3577_s3  ;;  %v1195_v63 = vadd.f32 %v3836_v39, %v3887_v8 }
0x18e7   :  { %v1421_v2 = vpop.permute.xlu1 %1420 }
0x18e8   :  { %1423 = vst.msk [vmem:[#allocation3 + $0x8] sm:$0xff] %vm221_vm2, %v1421_v2  ;;  %3058 = vmatmul.mubr.msk.f32.vlgmr.msra.gmra.mrb[22].mxu0 %vm221_vm2, %v1421_v2 }
0x18e9   :  { %3289 = vmatpush3.bf16.msra.mxu0 %v3851_v52  ;;  %3079 = vmatprep.mubr.msk.f32.mxu0 %vm3574_vm0, %v3575_v1 }
0x18ea   :  { %3290 = vmatprep.subr.bf16.mxu0 %v3573_v0 }
0x18ed   :  { %3292 = vmatpush3.bf16.msra.mxu0 %v3861_v55 }
0x18ee   :  { %3299 = vmatprep.subr.bf16.mxu0 %v3573_v0 }
0x19bb   :  { %v1493_v4 = vpop.f32.mrb[22].mxu0 }
0x19bc   :  { %v1497_v5 = vadd.f32 %v1493_v4, %v1180_v3  ;;  %v3059_v6 = vpop.f32.mrb[23].mxu0 }
0x19be   :  { %3449 = vtanh.f32 %v1497_v5  ;;  %v2741_v9 = vmul.f32 -1.442695, %v1497_v5 }
0x19c0   :  { %3451 = vpow2.f32 %v2741_v9 }
0x19c8   :  { %v3450_v7 = vpop.eup %3449 }
0x19c9   :  { %1507 = vrot.lane.b32.xlu0 %v3450_v7, %s3576_s25 }
0x19ca   :  { %v3452_v12 = vpop.eup %3451 }
0x19cb   :  { %v1501_v10 = vadd.f32 1.0, %v3452_v12 }
0x19cd   :  { %3453 = vrcp.f32 %v1501_v10 }
0x19d7   :  { %v3454_v13 = vpop.eup %3453 }
0x19d8   :  { %v1505_v59 = vmul.f32 %v3454_v13, %v1412_v54 }
0x1a3b   :  { %v1508_v61 = vpop.permute.xlu0 %1507 }
0x1a3c   :  { %v1510_v11 = vmul.f32 %v3454_v13, %v1508_v61 }
0x1a3e   :  { %1512 = vrot.lane.b32.xlu1 %v1510_v11, %s3577_s3 }
0x1ab0   :  { %v1513_v14 = vpop.permute.xlu1 %1512 }
0x1ab1   :  { %v1515_v38 = vadd.f32 %v1513_v14, %v1505_v59  ;;  %v2049_v14 = vld [vmem:[#allocation7 + $0x20] sm:$0xff] }
0x1ab3   :  { %3455 = vtanh.f32 %v1515_v38 }
0x1abd   :  { %v3456_v15 = vpop.eup %3455 }
0x1abe   :  { %1518 = vrot.lane.b32.xlu0 %v3456_v15, %s3576_s25 }
0x1b30   :  { %v1519_v16 = vpop.permute.xlu0 %1518 }
0x1b31   :  { %v1521_v17 = vmul.f32 %v3454_v13, %v1519_v16  ;;  %v2051_v16 = vld [vmem:[#allocation7 + $0x30] sm:$0xff] }
0x1b33   :  { %1523 = vrot.lane.b32.xlu1 %v1521_v17, %s3577_s3  ;;  %v2052_v17 = vld [vmem:[#allocation7 + $0x38] sm:$0xff] }
0x1ba5   :  { %v1524_v18 = vpop.permute.xlu1 %1523 }
0x1ba6   :  { %1526 = vst.msk [vmem:[#allocation3 + $0x10] sm:$0xff] %vm221_vm2, %v1524_v18  ;;  %3069 = vmatmul.mubr.msk.f32.vlgmr.msra.gmra.mrb[14].mxu1 %vm221_vm2, %v1524_v18 }
0x1ba7   :  { %3295 = vmatpush3.bf16.msra.mxu1 %v3851_v52  ;;  %3090 = vmatprep.mubr.msk.f32.mxu1 %vm3574_vm0, %v3575_v1 }
0x1ba8   :  { %3296 = vmatprep.subr.bf16.mxu1 %v3573_v0 }
0x1bab   :  { %3298 = vmatpush3.bf16.msra.mxu1 %v3861_v55 }
0x1bac   :  { %3305 = vmatprep.subr.bf16.mxu1 %v3573_v0 }
0x1c79   :  { %v1596_v20 = vpop.f32.mrb[14].mxu1 }
0x1c7a   :  { %v1600_v21 = vadd.f32 %v1596_v20, %v1185_v19  ;;  %v3070_v22 = vpop.f32.mrb[15].mxu1  ;;  %v3315_v19 = vpack.c.bf16 %v2052_v17, %v2051_v16  ;;  %v2201_v20 = vld [vmem:[#allocation7 + $0x40] sm:$0xff]  ;;  %v2042_v16 = vld [vmem:[#allocation3] sm:$0xff] }
0x1c7c   :  { %3457 = vtanh.f32 %v1600_v21  ;;  %v2743_v24 = vmul.f32 -1.442695, %v1600_v21  ;;  %v2202_v21 = vld [vmem:[#allocation7 + $0x48] sm:$0xff] }
0x1c7d   :  { %v3324_v22 = vpack.c.bf16 %v2202_v21, %v2201_v20  ;;  %v2442_v20 = vld [vmem:[#allocation7 + $0xa8] sm:$0xff] }
0x1c7e   :  { %3459 = vpow2.f32 %v2743_v24  ;;  %v2204_v24 = vld [vmem:[#allocation7 + $0x58] sm:$0xff] }
0x1c86   :  { %v3458_v23 = vpop.eup %3457 }
0x1c87   :  { %1610 = vrot.lane.b32.xlu0 %v3458_v23, %s3576_s25  ;;  %v2203_v23 = vld [vmem:[#allocation7 + $0x50] sm:$0xff] }
0x1c88   :  { %v3460_v25 = vpop.eup %3459 }
0x1c89   :  { %v1604_v26 = vadd.f32 1.0, %v3460_v25  ;;  %v2047_v25 = vld [vmem:[#allocation3 + $0x8] sm:$0xff] }
0x1c8b   :  { %3461 = vrcp.f32 %v1604_v26  ;;  %v3327_v26 = vpack.c.bf16 %v2204_v24, %v2203_v23  ;;  %v2444_v23 = vld [vmem:[#allocation7 + $0xb8] sm:$0xff] }
0x1c95   :  { %v3462_v27 = vpop.eup %3461 }
0x1c96   :  { %v1608_v30 = vmul.f32 %v3462_v27, %v1515_v38  ;;  %v2050_v38 = vld [vmem:[#allocation7 + $0x28] sm:$0xff] }
0x1c97   :  { %v3312_v15 = vpack.c.bf16 %v2050_v38, %v2049_v14  ;;  %v2283_v38 = vld [vmem:[#allocation7 + $0x70] sm:$0xff] }
0x1cf9   :  { %v1611_v28 = vpop.permute.xlu0 %1610 }
0x1cfa   :  { %v1613_v29 = vmul.f32 %v3462_v27, %v1611_v28  ;;  %v2362_v28 = vld [vmem:[#allocation7 + $0x88] sm:$0xff] }
0x1cfc   :  { %1615 = vrot.lane.b32.xlu1 %v1613_v29, %s3577_s3 }
0x1d6e   :  { %v1616_v31 = vpop.permute.xlu1 %1615 }
0x1d6f   :  { %v1618_v36 = vadd.f32 %v1616_v31, %v1608_v30  ;;  %v2363_v30 = vld [vmem:[#allocation7 + $0x90] sm:$0xff]  ;;  %v2364_v31 = vld [vmem:[#allocation7 + $0x98] sm:$0xff] }
0x1d71   :  { %3463 = vtanh.f32 %v1618_v36 }
0x1d7b   :  { %v3464_v32 = vpop.eup %3463 }
0x1d7c   :  { %1621 = vrot.lane.b32.xlu0 %v3464_v32, %s3576_s25  ;;  %v3339_v32 = vpack.c.bf16 %v2364_v31, %v2363_v30 }
0x1dee   :  { %v1622_v33 = vpop.permute.xlu0 %1621 }
0x1def   :  { %v1624_v35 = vmul.f32 %v3462_v27, %v1622_v33  ;;  %v2361_v27 = vld [vmem:[#allocation7 + $0x80] sm:$0xff] }
0x1df0   :  { %v3336_v29 = vpack.c.bf16 %v2362_v28, %v2361_v27  ;;  %v1205_v27 = vadd.f32 %v3915_v56, %v3887_v8 }
0x1df1   :  { %1626 = vrot.lane.b32.xlu1 %v1624_v35, %s3577_s3  ;;  %v1200_v35 = vadd.f32 %v3887_v8, %v3917_v58 }
0x1e63   :  { %v1627_v37 = vpop.permute.xlu1 %1626 }
0x1e64   :  { %1629 = vst.msk [vmem:[#allocation3 + $0x18] sm:$0xff] %vm221_vm2, %v1627_v37  ;;  %3080 = vmatmul.mubr.msk.f32.vlgmr.msra.gmra.mrb[24].mxu0 %vm221_vm2, %v1627_v37 }
0x1e65   :  { %3301 = vmatpush3.bf16.msra.mxu0 %v3851_v52  ;;  %3101 = vmatprep.mubr.msk.f32.mxu0 %vm3574_vm0, %v3575_v1 }
0x1e66   :  { %3302 = vmatprep.subr.bf16.mxu0 %v3573_v0 }
0x1e69   :  { %3304 = vmatpush3.bf16.msra.mxu0 %v3861_v55 }
0x1e6a   :  { %3311 = vmatprep.subr.bf16.mxu0 %v3573_v0 }
0x1e6b   :  { %v2279_v24 = vld [vmem:[#allocation3 + $0x18] sm:$0xff] }
0x1f37   :  { %v1699_v62 = vpop.f32.mrb[24].mxu0 }
0x1f38   :  { %v1703_v42 = vadd.f32 %v1699_v62, %v1190_v41  ;;  %v3081_v43 = vpop.f32.mrb[25].mxu0 }
0x1f3a   :  { %3465 = vtanh.f32 %v1703_v42  ;;  %v2745_v45 = vmul.f32 -1.442695, %v1703_v42 }
0x1f3c   :  { %3467 = vpow2.f32 %v2745_v45 }
0x1f44   :  { %v3466_v44 = vpop.eup %3465 }
0x1f45   :  { %1713 = vrot.lane.b32.xlu0 %v3466_v44, %s3576_s25 }
0x1f46   :  { %v3468_v46 = vpop.eup %3467 }
0x1f47   :  { %v1707_v47 = vadd.f32 1.0, %v3468_v46 }
0x1f49   :  { %3469 = vrcp.f32 %v1707_v47 }
0x1f53   :  { %v3470_v34 = vpop.eup %3469 }
0x1f54   :  { %v1711_v50 = vmul.f32 %v3470_v34, %v1618_v36  ;;  %v2199_v36 = vld [vmem:[#allocation3 + $0x10] sm:$0xff] }
0x1fb7   :  { %v1714_v48 = vpop.permute.xlu0 %1713 }
0x1fb8   :  { %v1716_v49 = vmul.f32 %v3470_v34, %v1714_v48 }
0x1fba   :  { %1718 = vrot.lane.b32.xlu1 %v1716_v49, %s3577_s3 }
0x202c   :  { %v1719_v51 = vpop.permute.xlu1 %1718 }
0x202d   :  { %v1721_v40 = vadd.f32 %v1719_v51, %v1711_v50 }
0x202f   :  { %3471 = vtanh.f32 %v1721_v40 }
0x2039   :  { %v3472_v53 = vpop.eup %3471 }
0x203a   :  { %1724 = vrot.lane.b32.xlu0 %v3472_v53, %s3576_s25 }
0x20ac   :  { %v1725_v54 = vpop.permute.xlu0 %1724 }
0x20ad   :  { %v1727_v57 = vmul.f32 %v3470_v34, %v1725_v54 }
0x20af   :  { %1729 = vrot.lane.b32.xlu1 %v1727_v57, %s3577_s3 }
0x2121   :  { %v1730_v60 = vpop.permute.xlu1 %1729 }
0x2122   :  { %1732 = vst.msk [vmem:[#allocation3 + $0x20] sm:$0xff] %vm221_vm2, %v1730_v60  ;;  %3091 = vmatmul.mubr.msk.f32.vlgmr.msra.gmra.mrb[16].mxu1 %vm221_vm2, %v1730_v60 }
0x2123   :  { %3307 = vmatpush3.bf16.msra.mxu1 %v3851_v52  ;;  %3112 = vmatprep.mubr.msk.f32.mxu1 %vm3574_vm0, %v3575_v1 }
0x2124   :  { %3308 = vmatprep.subr.bf16.mxu1 %v3573_v0 }
0x2127   :  { %3310 = vmatpush3.bf16.msra.mxu1 %v3861_v55 }
0x2128   :  { %3317 = vmatprep.subr.bf16.mxu1 %v3573_v0 }
0x2129   :  { %v2359_v33 = vld [vmem:[#allocation3 + $0x20] sm:$0xff] }
0x21f5   :  { %v1802_v2 = vpop.f32.mrb[16].mxu1 }
0x21f6   :  { %v1806_v3 = vadd.f32 %v1802_v2, %v1195_v63  ;;  %v3092_v4 = vpop.f32.mrb[17].mxu1  ;;  %v2521_v63 = vld [vmem:[#allocation7 + $0xc0] sm:$0xff]  ;;  %v2522_v2 = vld [vmem:[#allocation7 + $0xc8] sm:$0xff] }
0x21f7   :  { %v2523_v4 = vld [vmem:[#allocation7 + $0xd0] sm:$0xff] }
0x21f8   :  { %3473 = vtanh.f32 %v1806_v3  ;;  %v2747_v52 = vmul.f32 -1.442695, %v1806_v3  ;;  %v3348_v3 = vpack.c.bf16 %v2522_v2, %v2521_v63  ;;  %v2603_v2 = vld [vmem:[#allocation7 + $0xf0] sm:$0xff] }
0x21fa   :  { %3475 = vpow2.f32 %v2747_v52 }
0x2202   :  { %v3474_v5 = vpop.eup %3473 }
0x2203   :  { %1816 = vrot.lane.b32.xlu0 %v3474_v5, %s3576_s25  ;;  %v2524_v5 = vld [vmem:[#allocation7 + $0xd8] sm:$0xff] }
0x2204   :  { %v3476_v6 = vpop.eup %3475  ;;  %v3351_v52 = vpack.c.bf16 %v2524_v5, %v2523_v4 }
0x2205   :  { %v1810_v7 = vadd.f32 1.0, %v3476_v6 }
0x2207   :  { %3477 = vrcp.f32 %v1810_v7 }
0x2211   :  { %v3478_v9 = vpop.eup %3477 }
0x2212   :  { %v1814_v10 = vmul.f32 %v3478_v9, %v1721_v40 }
0x2275   :  { %v1817_v12 = vpop.permute.xlu0 %1816 }
0x2276   :  { %v1819_v55 = vmul.f32 %v3478_v9, %v1817_v12  ;;  %v2044_v12 = vld [vmem:[#allocation7 + $0x8] sm:$0xff] }
0x2278   :  { %1821 = vrot.lane.b32.xlu1 %v1819_v55, %s3577_s3 }
0x22ea   :  { %v1822_v13 = vpop.permute.xlu1 %1821 }
0x22eb   :  { %v3975_v39 = vadd.f32 %v1822_v13, %v1814_v10  ;;  %v2045_v10 = vld [vmem:[#allocation7 + $0x10] sm:$0xff]  ;;  %v2046_v13 = vld [vmem:[#allocation7 + $0x18] sm:$0xff] }
0x22ed   :  { %3479 = vtanh.f32 %v3975_v39 }
0x22f7   :  { %v3480_v61 = vpop.eup %3479 }
0x22f8   :  { %1827 = vrot.lane.b32.xlu0 %v3480_v61, %s3576_s25  ;;  %v3321_v61 = vpack.c.bf16 %v2046_v13, %v2045_v10 }
0x236a   :  { %v1828_v11 = vpop.permute.xlu0 %1827 }
0x236b   :  { %v1830_v59 = vmul.f32 %v3478_v9, %v1828_v11  ;;  %v2043_v9 = vld [vmem:[#allocation7] sm:$0xff] }
0x236c   :  { %v3318_v55 = vpack.c.bf16 %v2044_v12, %v2043_v9  ;;  %v2281_v11 = vld [vmem:[#allocation7 + $0x60] sm:$0xff]  ;;  %v2760_v9 = vld [vmem:[%s4072_s8] ss:$0 sm:$0xff] }
0x236d   :  { %1832 = vrot.lane.b32.xlu1 %v1830_v59, %s3577_s3  ;;  %v2282_v59 = vld [vmem:[#allocation7 + $0x68] sm:$0xff] }
0x236e   :  { %v3330_v14 = vpack.c.bf16 %v2282_v59, %v2281_v11 }
0x23df   :  { %v1833_v18 = vpop.permute.xlu1 %1832 }
0x23e0   :  { %1835 = vst.msk [vmem:[#allocation3 + $0x28] sm:$0xff] %vm221_vm2, %v1833_v18  ;;  %3102 = vmatmul.mubr.msk.f32.vlgmr.msra.gmra.mrb[26].mxu0 %vm221_vm2, %v1833_v18 }
0x23e1   :  { %3313 = vmatpush3.bf16.msra.mxu0 %v3312_v15  ;;  %3123 = vmatprep.mubr.msk.f32.mxu0 %vm3574_vm0, %v3575_v1  ;;  %v2284_v15 = vld [vmem:[#allocation7 + $0x78] sm:$0xff] }
0x23e2   :  { %3314 = vmatprep.subr.bf16.mxu0 %v3573_v0  ;;  %v3333_v18 = vpack.c.bf16 %v2284_v15, %v2283_v38 }
0x23e5   :  { %3316 = vmatpush3.bf16.msra.mxu0 %v3315_v19  ;;  %v2441_v19 = vld [vmem:[#allocation7 + $0xa0] sm:$0xff] }
0x23e6   :  { %3323 = vmatprep.subr.bf16.mxu0 %v3573_v0  ;;  %v3342_v21 = vpack.c.bf16 %v2442_v20, %v2441_v19 }
0x23e8   :  { %3124 = vmatmul.mubr.msk.f32.vlgmr.msra.gmra.mrb[28].mxu0 %vm221_vm2, %v2047_v25 }
0x23e9   :  { %3325 = vmatpush3.bf16.msra.mxu0 %v3324_v22  ;;  %3145 = vmatprep.mubr.msk.f32.mxu0 %vm3574_vm0, %v3575_v1  ;;  %v2443_v22 = vld [vmem:[#allocation7 + $0xb0] sm:$0xff] }
0x23ea   :  { %3326 = vmatprep.subr.bf16.mxu0 %v3573_v0  ;;  %v3345_v25 = vpack.c.bf16 %v2444_v23, %v2443_v22 }
0x23ed   :  { %3328 = vmatpush3.bf16.msra.mxu0 %v3327_v26  ;;  %v2439_v26 = vld [vmem:[#allocation3 + $0x28] sm:$0xff] }
0x23ee   :  { %3335 = vmatprep.subr.bf16.mxu0 %v3573_v0 }
0x23f0   :  { %3146 = vmatmul.mubr.msk.f32.vlgmr.msra.gmra.mrb[30].mxu0 %vm221_vm2, %v2199_v36 }
0x23f1   :  { %3337 = vmatpush3.bf16.msra.mxu0 %v3336_v29  ;;  %3167 = vmatprep.mubr.msk.f32.mxu0 %vm3574_vm0, %v3575_v1 }
0x23f2   :  { %3338 = vmatprep.subr.bf16.mxu0 %v3573_v0 }
0x23f5   :  { %3340 = vmatpush3.bf16.msra.mxu0 %v3339_v32 }
0x23f6   :  { %3347 = vmatprep.subr.bf16.mxu0 %v3573_v0 }
0x23f8   :  { %3168 = vmatmul.mubr.msk.f32.vlgmr.msra.gmra.mrb[32].mxu0 %vm221_vm2, %v2359_v33 }
0x23f9   :  { %3189 = vmatprep.mubr.msk.f32.mxu0 %vm3574_vm0, %v3575_v1  ;;  %3349 = vmatpush3.bf16.msra.mxu0 %v3348_v3  ;;  %v2604_v3 = vld [vmem:[#allocation7 + $0xf8] sm:$0xff] }
0x23fa   :  { %3350 = vmatprep.subr.bf16.mxu0 %v3573_v0  ;;  %v3357_v4 = vpack.c.bf16 %v2604_v3, %v2603_v2 }
0x23fd   :  { %3352 = vmatpush3.bf16.msra.mxu0 %v3351_v52 }
0x24b3   :  { %v1905_v37 = vpop.f32.mrb[26].mxu0 }
0x24b4   :  { %v1909_v41 = vadd.f32 %v1905_v37, %v1200_v35  ;;  %v3103_v62 = vpop.f32.mrb[27].mxu0 }
0x24b6   :  { %3481 = vtanh.f32 %v1909_v41  ;;  %v2749_v48 = vmul.f32 -1.442695, %v1909_v41 }
0x24b8   :  { %3483 = vpow2.f32 %v2749_v48 }
0x24bb   :  { %v4001_v42 = vpop.f32.mrb[28].mxu0 }
0x24bc   :  { %v3125_v43 = vpop.f32.mrb[29].mxu0 }
0x24c0   :  { %v3482_v44 = vpop.eup %3481 }
0x24c1   :  { %1919 = vrot.lane.b32.xlu0 %v3482_v44, %s3576_s25 }
0x24c2   :  { %v3484_v49 = vpop.eup %3483 }
0x24c3   :  { %v4004_v45 = vpop.f32.mrb[30].mxu0  ;;  %v1913_v58 = vadd.f32 1.0, %v3484_v49 }
0x24c4   :  { %v3147_v46 = vpop.f32.mrb[31].mxu0 }
0x24c5   :  { %3485 = vrcp.f32 %v1913_v58 }
0x24cb   :  { %v4006_v47 = vpop.f32.mrb[32].mxu0 }
0x24cc   :  { %v3169_v34 = vpop.f32.mrb[33].mxu0 }
0x24cf   :  { %v3486_v50 = vpop.eup %3485 }
0x24d0   :  { %v1917_v53 = vmul.f32 %v3486_v50, %v3975_v39 }
0x2533   :  { %v1920_v51 = vpop.permute.xlu0 %1919 }
0x2534   :  { %v1922_v40 = vmul.f32 %v3486_v50, %v1920_v51 }
0x2536   :  { %1924 = vrot.lane.b32.xlu1 %v1922_v40, %s3577_s3 }
0x25a8   :  { %v1925_v54 = vpop.permute.xlu1 %1924 }
0x25a9   :  { %v4010_v57 = vadd.f32 %v1925_v54, %v1917_v53  ;;  %v2601_v54 = vld [vmem:[#allocation7 + $0xe0] sm:$0xff] }
0x25ab   :  { %3487 = vtanh.f32 %v4010_v57 }
0x25b5   :  { %v3488_v60 = vpop.eup %3487 }
0x25b6   :  { %1930 = vrot.lane.b32.xlu0 %v3488_v60, %s3576_s25  ;;  %v2602_v60 = vld [vmem:[#allocation7 + $0xe8] sm:$0xff] }
0x25b7   :  { %v3354_v63 = vpack.c.bf16 %v2602_v60, %v2601_v54 }
0x2628   :  { %v1931_v6 = vpop.permute.xlu0 %1930 }
0x2629   :  { %v1933_v7 = vmul.f32 %v3486_v50, %v1931_v6 }
0x262b   :  { %1935 = vrot.lane.b32.xlu1 %v1933_v7, %s3577_s3 }
0x269d   :  { %v1936_v39 = vpop.permute.xlu1 %1935 }
0x269e   :  { %1938 = vst.msk [vmem:[#allocation3 + $0x30] sm:$0xff] %vm221_vm2, %v1936_v39  ;;  %3113 = vmatmul.mubr.msk.f32.vlgmr.msra.gmra.mrb[18].mxu1 %vm221_vm2, %v1936_v39 }
0x269f   :  { %3319 = vmatpush3.bf16.msra.mxu1 %v3318_v55  ;;  %3134 = vmatprep.mubr.msk.f32.mxu1 %vm3574_vm0, %v3575_v1 }
0x26a0   :  { %3320 = vmatprep.subr.bf16.mxu1 %v3573_v0 }
0x26a3   :  { %3322 = vmatpush3.bf16.msra.mxu1 %v3321_v61 }
0x26a4   :  { %3329 = vmatprep.subr.bf16.mxu1 %v3573_v0 }
0x26a5   :  { %v2519_v17 = vld [vmem:[#allocation3 + $0x30] sm:$0xff] }
0x26a6   :  { %3135 = vmatmul.mubr.msk.f32.vlgmr.msra.gmra.mrb[20].mxu1 %vm221_vm2, %v2042_v16  ;;  %3190 = vmatmul.mubr.msk.f32.vlgmr.msra.gmra.mrb[34].mxu0 %vm221_vm2, %v2519_v17 }
0x26a7   :  { %3331 = vmatpush3.bf16.msra.mxu1 %v3330_v14  ;;  %3156 = vmatprep.mubr.msk.f32.mxu1 %vm3574_vm0, %v3575_v1 }
0x26a8   :  { %3332 = vmatprep.subr.bf16.mxu1 %v3573_v0 }
0x26ab   :  { %3334 = vmatpush3.bf16.msra.mxu1 %v3333_v18 }
0x26ac   :  { %3341 = vmatprep.subr.bf16.mxu1 %v3573_v0 }
0x26ae   :  { %3157 = vmatmul.mubr.msk.f32.vlgmr.msra.gmra.mrb[22].mxu1 %vm221_vm2, %v2279_v24 }
0x26af   :  { %3343 = vmatpush3.bf16.msra.mxu1 %v3342_v21  ;;  %3178 = vmatprep.mubr.msk.f32.mxu1 %vm3574_vm0, %v3575_v1 }
0x26b0   :  { %3344 = vmatprep.subr.bf16.mxu1 %v3573_v0 }
0x26b3   :  { %3346 = vmatpush3.bf16.msra.mxu1 %v3345_v25 }
0x26b4   :  { %3353 = vmatprep.subr.bf16.mxu1 %v3573_v0 }
0x26b6   :  { %3179 = vmatmul.mubr.msk.f32.vlgmr.msra.gmra.mrb[24].mxu1 %vm221_vm2, %v2439_v26 }
0x26b7   :  { %3200 = vmatprep.mubr.msk.f32.mxu1 %vm3574_vm0, %v3575_v1  ;;  %3355 = vmatpush3.bf16.msra.mxu1 %v3354_v63 }
0x26b8   :  { %3356 = vmatprep.subr.bf16.mxu1 %v3573_v0 }
0x26bb   :  { %3358 = vmatpush3.bf16.msra.mxu1 %v3357_v4 }
0x2771   :  { %v2008_v28 = vpop.f32.mrb[18].mxu1 }
0x2772   :  { %v2012_v29 = vadd.f32 %v2008_v28, %v1205_v27  ;;  %v3114_v30 = vpop.f32.mrb[19].mxu1 }
0x2774   :  { %3489 = vtanh.f32 %v2012_v29  ;;  %v2751_v48 = vmul.f32 -1.442695, %v2012_v29 }
0x2776   :  { %3491 = vpow2.f32 %v2751_v48 }
0x2779   :  { %v2195_v31 = vpop.f32.mrb[20].mxu1  ;;  %v2594_v36 = vpop.f32.mrb[34].mxu0 }
0x277a   :  { %v2196_v32 = vadd.f32 %v2195_v31, %v4001_v42  ;;  %v3136_v33 = vpop.f32.mrb[21].mxu1  ;;  %v3191_v35 = vpop.f32.mrb[35].mxu0 }
0x277c   :  { %v2278_v37 = vadd.f32 %v4004_v45, %v2196_v32 }
0x277e   :  { %v3490_v41 = vpop.eup %3489 }
0x277f   :  { %2022 = vrot.lane.b32.xlu0 %v3490_v41, %s3576_s25 }
0x2780   :  { %v3492_v49 = vpop.eup %3491 }
0x2781   :  { %v2354_v62 = vpop.f32.mrb[22].mxu1  ;;  %v2016_v42 = vadd.f32 1.0, %v3492_v49 }
0x2782   :  { %v2358_v1 = vadd.f32 %v2354_v62, %v2278_v37  ;;  %v3158_v43 = vpop.f32.mrb[23].mxu1 }
0x2783   :  { %3493 = vrcp.f32 %v2016_v42 }
0x2784   :  { %v2438_v8 = vadd.f32 %v4006_v47, %v2358_v1 }
0x2789   :  { %v2514_v56 = vpop.f32.mrb[24].mxu1 }
0x278a   :  { %v2518_v44 = vadd.f32 %v2514_v56, %v2438_v8  ;;  %v3180_v46 = vpop.f32.mrb[25].mxu1 }
0x278c   :  { %v2598_v34 = vadd.f32 %v2594_v36, %v2518_v44 }
0x278d   :  { %v3494_v58 = vpop.eup %3493 }
0x278e   :  { %v2020_v51 = vmul.f32 %v3494_v58, %v4010_v57 }
0x27f1   :  { %v2023_v50 = vpop.permute.xlu0 %2022 }
0x27f2   :  { %v2025_v45 = vmul.f32 %v3494_v58, %v2023_v50 }
0x27f4   :  { %2027 = vrot.lane.b32.xlu1 %v2025_v45, %s3577_s3 }
0x2866   :  { %v2028_v40 = vpop.permute.xlu1 %2027 }
0x2867   :  { %v2030_v53 = vadd.f32 %v2028_v40, %v2020_v51 }
0x2869   :  { %3495 = vtanh.f32 %v2030_v53 }
0x2873   :  { %v3496_v47 = vpop.eup %3495 }
0x2874   :  { %2033 = vrot.lane.b32.xlu0 %v3496_v47, %s3576_s25 }
0x28e6   :  { %v2034_v5 = vpop.permute.xlu0 %2033 }
0x28e7   :  { %v2036_v52 = vmul.f32 %v3494_v58, %v2034_v5 }
0x28e9   :  { %2038 = vrot.lane.b32.xlu1 %v2036_v52, %s3577_s3 }
0x295b   :  { %v2039_v57 = vpop.permute.xlu1 %2038 }
0x295c   :  { %2041 = vst.msk [vmem:[#allocation3 + $0x38] sm:$0xff] %vm221_vm2, %v2039_v57 }
0x2963   :  { %v2599_v6 = vld [vmem:[#allocation3 + $0x38] sm:$0xff] }
0x2964   :  { %3201 = vmatmul.mubr.msk.f32.vlgmr.msra.gmra.mrb[26].mxu1 %vm221_vm2, %v2599_v6 }
0x2a37   :  { %v2674_v7 = vpop.f32.mrb[26].mxu1 }
0x2a38   :  { %v2678_v12 = vadd.f32 %v2674_v7, %v2598_v34  ;;  %v3202_v0 = vpop.f32.mrb[27].mxu1 }
0x2a3a   :  { %v2686_v55 = vadd.f32 %v2760_v9, %v2678_v12 }
0x2a3c   :  { %2687 = vst [vmem:[#allocation9] sm:$0xff] %v2686_v55 }
0x2a3d   :  { %3552 = shalt.err (!%p3549_p6)
}
0x2a3e   :  { %s3553_s10 = scalar_lea.hbm %s4073_s9, 128 }
0x2a3f   :  { %p3554_p7 = scmp.ne.s32.totalorder %s4073_s9, %s3553_s10  ;;  %p3557_p8 = scmp.lt.u32.totalorder %s3553_s10, %s4073_s9 }
0x2a41   :  { %p3559_p9 = pnand %p3557_p8, %p3554_p7 }
0x2a43   :  { %3562 = shalt.err (!%p3559_p9)
}
0x2a44   :  { %2697 = dma.vmem_to_hbm [thread:$0]  %s2695_s11, 128, %s4073_s9, [#allocation6]  }
0x2a45   :  { %3567 = dma.done.wait [#allocation6], 128  }
0x2a46   :  { %3568 = vsyncadd [#allocation6], 4294967168 }
0x2a47   :  { %2701 = vsyncpa [#allocation5], 1 }
0x2a48   :  { %2702 = vsyncpa [#allocation8], 1 }
0x2a49   :  { %2703 = vsyncpa [#allocation6], 1 }

</bundles_post_ra>
